<compile_context>
chip_gen: v7x
topology: tpu7x:2x2x1
jax: 0.10.0
libtpu: 0.0.40
codegen_flags: <defaults>
</compile_context>

<pallas_src>
import jax
import jax.numpy as jnp
from jax.experimental import pallas as pl
from jax.experimental.pallas import tpu as pltpu

FOCAL_ALPHA = 0.25
FOCAL_GAMMA = 2.0   # gamma == 2 -> implemented as pt * pt
DICE_EPS = 1e-3


def _cdiv(a, b):
    return -(-a // b)


def _round_up(a, m):
    return _cdiv(a, m) * m


def _tpu_params():
    """Return (multi_tensorcore, input-tile VMEM budget, scoped-vmem limit)."""
    try:
        kind = jax.devices()[0].device_kind.lower()
    except Exception:
        kind = ""
    if "v5" in kind or "v6" in kind:
        # v5e/v5p/v6e: 128 MiB VMEM, one TensorCore per Pallas core.
        return False, 40 * (1 << 20), 88 * (1 << 20)
    if "7" in kind:
        # v7x: 64 MiB VMEM per TensorCore, 2 TensorCores per chip.
        return True, 20 * (1 << 20), 44 * (1 << 20)
    # Unknown chip: conservative defaults (same as the previously validated run).
    return False, 12 * (1 << 20), 32 * (1 << 20)


def _criterion_kernel(cnt_ref, dmap_ref, perm_ref,
                      labc_ref, labr_ref, cls_ref, pred_ref, ins_ref,
                      seg_out_ref, cls_out_ref):
    """Processes one tn-row slab of grid cells.

    Scalar prefetch (SMEM):
      cnt_ref  : (n_tiles,) int32  positive-cell count of the tile at each grid step
      dmap_ref : (n_tiles,) int32  pred/ins DMA tile map (index_map only)
      perm_ref : (n_tiles,) int32  tile permutation, positives first (index_map only)
    VMEM blocks:
      labc_ref : (tn, 1)  int32  label column (0 background, -1 padding)  -> dice masks
      labr_ref : (1, tn)  int32  label row (lane-dense)                   -> focal target
      cls_ref  : (C, tn)         classification logits (lane-dense)
      pred_ref : (tn, HW)        mask logits
      ins_ref  : (tn, HW)        binary mask targets
    Outputs (resident across the inner 'arbitrary' axis):
      seg_out_ref, cls_out_ref : (1, 1, 1) f32 per-chunk partial sums
    """
    del dmap_ref, perm_ref  # consumed only by the index_maps
    p = pl.program_id(0)
    j = pl.program_id(1)
    nj = pl.num_programs(1)
    g = p * nj + j

    @pl.when(j == 0)
    def _():
        seg_out_ref[...] = jnp.zeros_like(seg_out_ref)
        cls_out_ref[...] = jnp.zeros_like(cls_out_ref)

    # ---------------- sigmoid focal (classification) loss, lane-dense ----------------
    lab_r = labr_ref[...]                                     # (1, tn) int32
    valid = (lab_r >= 0).astype(jnp.float32)                  # padded cells -> 0
    x = cls_ref[...].astype(jnp.float32)                      # (C, tn)
    cls_ids = jax.lax.broadcasted_iota(jnp.int32, x.shape, 0) + 1   # classes 1..C
    # one_hot(label, C+1)[:, 1:]  ==  (label == class_id)
    tgt = (lab_r == cls_ids).astype(jnp.float32)              # (C, tn)
    # shared exp(-|x|) feeds both sigmoid(x) and the stable BCE softplus term
    e = jnp.exp(-jnp.abs(x))
    psig = jnp.where(x >= 0.0, 1.0, e) / (1.0 + e)            # sigmoid(x)
    bce = jnp.maximum(x, 0.0) - x * tgt + jnp.log1p(e)
    pt = (1.0 - psig) * tgt + psig * (1.0 - tgt)
    focal_w = (FOCAL_ALPHA * tgt + (1.0 - FOCAL_ALPHA) * (1.0 - tgt)) * (pt * pt)
    per_cell = jnp.sum(bce * focal_w, axis=0, keepdims=True)  # (1, tn) sublane reduce
    cls_out_ref[...] += jnp.sum(valid * per_cell).reshape(1, 1, 1)

    # ---------------- dice (segmentation) loss, gated on positive tiles ----------------
    # Negative-only / padding tiles do no mask work and (via the DMA tile map) never
    # trigger a fresh pred/ins DMA either.
    @pl.when(cnt_ref[g] > 0)
    def _():
        pos = (labc_ref[...] > 0).astype(jnp.float32)          # (tn, 1)
        z = pred_ref[...].astype(jnp.float32)                  # (tn, HW)
        ez = jnp.exp(-jnp.abs(z))
        pr = jnp.where(z >= 0.0, 1.0, ez) * pl.reciprocal(1.0 + ez, approx=True)
        t = ins_ref[...].astype(jnp.float32)
        a = jnp.sum(pr * t, axis=-1, keepdims=True)            # (tn, 1)
        # binary targets -> t*t == t: two lane reductions instead of three
        denom = jnp.sum(pr * pr + t, axis=-1, keepdims=True) + 2.0 * DICE_EPS
        dice = 1.0 - 2.0 * a * pl.reciprocal(denom, approx=True)
        # pos-masking == torch's pred_mask[pos_idx] gather followed by a sum
        seg_out_ref[...] += jnp.sum(pos * dice).reshape(1, 1, 1)


def _level_sums(cls_t, labels, pred2d, ins2d):
    """Run the Pallas kernel for one level, returning (seg_sum, cls_sum) scalars."""
    C, N = cls_t.shape
    HW = pred2d.shape[-1]
    pb = pred2d.dtype.itemsize
    ib = ins2d.dtype.itemsize

    multi_tc, data_budget, vmem_limit = _tpu_params()

    # --- VMEM-budgeted row tile, accounting for (8,128) tile padding of each block ---
    hw_pad = _round_up(HW, 128)
    per_row = 2 * (hw_pad * (pb + ib)        # pred + ins tiles (double buffered)
                   + 128 * 4                 # (tn,1) int32 label col padded to 128 lanes
                   + _round_up(C, 8) * 4     # (C,tn) cls block
                   + 8 * 4)                  # (1,tn) int32 label row padded to 8 sublanes
    tn = (int(data_budget // per_row) // 128) * 128
    tn = max(128, min(4096, tn))             # lane-axis blocks require tn % 128 == 0
    tn = min(tn, _round_up(N, 128))
    # TODO(synk): for very large mask HW (per_row*128 > budget) an HW-chunked grid axis
    # with per-row partial-sum scratch would be needed; not required for SOLO levels here.

    n_tiles_raw = _cdiv(N, tn)
    num_chunks = 2 if (multi_tc and n_tiles_raw >= 8) else 1   # megacore split: v7x only
    n_tiles = _round_up(n_tiles_raw, num_chunks)
    n_pad = n_tiles * tn
    T = n_tiles // num_chunks

    pad = n_pad - N
    if pad:
        # padded cells get label -1 -> masked out of both loss terms in-kernel
        labels = jnp.pad(labels, (0, pad), constant_values=-1)
        cls_t = jnp.pad(cls_t, ((0, 0), (0, pad)))
        pred2d = jnp.pad(pred2d, ((0, pad), (0, 0)))
        ins2d = jnp.pad(ins2d, ((0, pad), (0, 0)))

    label_col = labels[:, None]              # (Npad, 1) for the dice pos mask
    label_row = labels[None, :]              # (1, Npad) lane-dense for focal

    # --- scalar-prefetch tables ---
    pos_counts = jnp.sum((labels > 0).reshape(n_tiles, tn), axis=-1).astype(jnp.int32)
    # positives-first permutation, round-robined across chunks so each TensorCore
    # gets a share of the dice work on v7x
    sort_key = jnp.where(pos_counts > 0, 0, 1).astype(jnp.int32)
    sorted_tiles = jnp.argsort(sort_key, stable=True).astype(jnp.int32)
    grid_order = sorted_tiles.reshape(T, num_chunks).T.reshape(n_tiles)
    cnt = jnp.take(pos_counts, grid_order)
    # pred/ins DMA map: negative-only steps repeat the last positive tile's index so
    # the pipeline skips their mask DMAs entirely
    step_ids = jnp.arange(n_tiles, dtype=jnp.int32)
    last_pos_step = jax.lax.cummax(jnp.where(cnt > 0, step_ids, -1))
    dmap = jnp.where(last_pos_step >= 0,
                     jnp.take(grid_order, jnp.maximum(last_pos_step, 0)),
                     0).astype(jnp.int32)

    seg_part, cls_part = pl.pallas_call(
        _criterion_kernel,
        out_shape=(jax.ShapeDtypeStruct((num_chunks, 1, 1), jnp.float32),
                   jax.ShapeDtypeStruct((num_chunks, 1, 1), jnp.float32)),
        grid_spec=pltpu.PrefetchScalarGridSpec(
            num_scalar_prefetch=3,
            grid=(num_chunks, T),
            in_specs=[
                pl.BlockSpec((tn, 1),  lambda p, j, cnt, dmap, perm: (perm[p * T + j], 0)),
                pl.BlockSpec((1, tn),  lambda p, j, cnt, dmap, perm: (0, perm[p * T + j])),
                pl.BlockSpec((C, tn),  lambda p, j, cnt, dmap, perm: (0, perm[p * T + j])),
                pl.BlockSpec((tn, HW), lambda p, j, cnt, dmap, perm: (dmap[p * T + j], 0)),
                pl.BlockSpec((tn, HW), lambda p, j, cnt, dmap, perm: (dmap[p * T + j], 0)),
            ],
            out_specs=[
                pl.BlockSpec((1, 1, 1), lambda p, j, cnt, dmap, perm: (p, 0, 0)),
                pl.BlockSpec((1, 1, 1), lambda p, j, cnt, dmap, perm: (p, 0, 0)),
            ],
        ),
        compiler_params=pltpu.CompilerParams(
            dimension_semantics=("parallel", "arbitrary"),
            vmem_limit_bytes=vmem_limit),
    )(cnt, dmap, grid_order, label_col, label_row, cls_t, pred2d, ins2d)

    return jnp.sum(seg_part), jnp.sum(cls_part)


def criterion_forward_single(cls_score, pred_mask, cate_label, ins_mask,
                             num_total_pos):
    """Mirror of Criterion.forward_single for one FPN level."""
    B, C, S, _ = cls_score.shape
    N = B * S * S
    HW = pred_mask.shape[-2] * pred_mask.shape[-1]

    # lane-dense class layout (C, N); same (b, y, x) cell ordering as the labels
    cls_t = jnp.transpose(cls_score, (1, 0, 2, 3)).reshape(C, N)
    labels = cate_label.reshape(N).astype(jnp.int32)
    # NOTE: no wrapper-side dtype casts of the big mask tensors (that would be an
    # extra HBM pass); the kernel computes in f32 regardless of the input dtype.
    pred2d = pred_mask.reshape(N, HW)
    ins2d = ins_mask.reshape(N, HW)

    seg_sum, cls_sum = _level_sums(cls_t, labels, pred2d, ins2d)

    num_pos_level = jnp.sum(labels > 0)
    # seg_weight = 1.0 if pred_mask[pos_idx].numel() else 0.0
    seg_weight = jnp.where(num_pos_level > 0, 1.0, 0.0)
    avg = jnp.asarray(num_total_pos, jnp.float32)

    seg_loss = seg_weight * seg_sum / avg
    cls_loss = cls_sum / (avg + 1.0)
    return seg_loss, cls_loss


def criterion_forward(pred_results, target_results):
    """Mirror of Criterion.forward: multi_apply over levels + cat."""
    cate_labels, ins_masks, num_total_pos, _num_total_neg = target_results
    cls_scores, pred_masks = pred_results

    # TODO(synk): levels sharing the same mask HW could be fused into one pallas_call,
    # but the required concatenation is an extra full HBM pass over the mask tensors,
    # which outweighs the saved launch overhead at realistic sizes; kept per-level.
    seg_losses, cls_losses = [], []
    for cls_s, pm, cl, im in zip(cls_scores, pred_masks, cate_labels, ins_masks):
        s, c = criterion_forward_single(cls_s, pm, cl, im, num_total_pos)
        seg_losses.append(s)
        cls_losses.append(c)
    return jnp.stack(seg_losses), jnp.stack(cls_losses)


if __name__ == "__main__":
    key = jax.random.PRNGKey(0)
    num_classes = 4
    B = 2
    grid_sizes = [8, 4]          # two FPN levels
    Hm = Wm = 16                 # mask spatial size

    cls_scores, pred_masks, cate_labels, ins_masks = [], [], [], []
    for S in grid_sizes:
        key, k1, k2, k3, k4 = jax.random.split(key, 5)
        cls_scores.append(
            jax.random.normal(k1, (B, num_classes, S, S), jnp.float32))
        pred_masks.append(
            jax.random.normal(k2, (B, S * S, Hm, Wm), jnp.float32))
        cate_labels.append(
            jax.random.randint(k3, (B, S, S), 0, num_classes + 1, jnp.int32))
        ins_masks.append(
            (jax.random.uniform(k4, (B, S * S, Hm, Wm)) > 0.5).astype(jnp.float32))

    num_total_pos = sum(int(jnp.sum(cl > 0)) for cl in cate_labels)
    num_total_neg = sum(cl.size for cl in cate_labels) - num_total_pos

    pred_results = (cls_scores, pred_masks)
    target_results = (cate_labels, ins_masks, num_total_pos, num_total_neg)

    seg_loss, cls_loss = criterion_forward(pred_results, target_results)
    jax.block_until_ready((seg_loss, cls_loss))
    print("KERNEL_OK")
</pallas_src>

<mosaic_0001>
module attributes {stable_mosaic.version = 11 : i64} {
  func.func @_criterion_kernel(%arg0: i32, %arg1: i32, %arg2: memref<1xi32, #tpu.memory_space<smem>>, %arg3: memref<1xi32, #tpu.memory_space<smem>>, %arg4: memref<1xi32, #tpu.memory_space<smem>>, %arg5: memref<128x1xi32, #tpu.memory_space<vmem>>, %arg6: memref<1x128xi32, #tpu.memory_space<vmem>>, %arg7: memref<4x128xf32, #tpu.memory_space<vmem>>, %arg8: memref<128x256xf32, #tpu.memory_space<vmem>>, %arg9: memref<128x256xf32, #tpu.memory_space<vmem>>, %arg10: memref<1x1x1xf32, #tpu.memory_space<vmem>>, %arg11: memref<1x1x1xf32, #tpu.memory_space<vmem>>) attributes {dimension_semantics = [#tpu.dimension_semantics<parallel>, #tpu.dimension_semantics<arbitrary>], iteration_bounds = array<i64: 1, 1>, scalar_prefetch = 3 : i64, scratch_operands = 0 : i64, tpu.core_type = #tpu.core_type<tc>, window_params = [{transform_indices = @transform_0, window_bounds = array<i64: 128, 1>}, {transform_indices = @transform_1, window_bounds = array<i64: 1, 128>}, {transform_indices = @transform_2, window_bounds = array<i64: 4, 128>}, {transform_indices = @transform_3, window_bounds = array<i64: 128, 256>}, {transform_indices = @transform_4, window_bounds = array<i64: 128, 256>}, {transform_indices = @transform_5, window_bounds = array<i64: 1, 1, 1>}, {transform_indices = @transform_6, window_bounds = array<i64: 1, 1, 1>}]} {
    %c1_i32 = arith.constant 1 : i32
    %0 = arith.muli %arg0, %c1_i32 : i32
    %1 = arith.addi %0, %arg1 : i32
    %c0_i32 = arith.constant 0 : i32
    %2 = arith.cmpi eq, %arg1, %c0_i32 : i32
    %3 = arith.extui %2 : i1 to i32
    %c0_i32_0 = arith.constant 0 : i32
    %4 = arith.cmpi ne, %3, %c0_i32_0 : i32
    scf.if %4 {
      %cst_25 = arith.constant 0.000000e+00 : f32
      %68 = vector.broadcast %cst_25 : f32 to vector<1x1x1xf32>
      %c0_26 = arith.constant 0 : index
      %c0_27 = arith.constant 0 : index
      %c0_28 = arith.constant 0 : index
      %69 = vector.load %arg10[%c0_26, %c0_27, %c0_28] : memref<1x1x1xf32, #tpu.memory_space<vmem>>, vector<1x1x1xf32>
      tpu.vector_store %arg10[%c0_26, %c0_27, %c0_28], %68 {strides = array<i32>} : memref<1x1x1xf32, #tpu.memory_space<vmem>>, vector<1x1x1xf32>,
      %cst_29 = arith.constant 0.000000e+00 : f32
      %70 = vector.broadcast %cst_29 : f32 to vector<1x1x1xf32>
      %c0_30 = arith.constant 0 : index
      %c0_31 = arith.constant 0 : index
      %c0_32 = arith.constant 0 : index
      %71 = vector.load %arg11[%c0_30, %c0_31, %c0_32] : memref<1x1x1xf32, #tpu.memory_space<vmem>>, vector<1x1x1xf32>
      tpu.vector_store %arg11[%c0_30, %c0_31, %c0_32], %70 {strides = array<i32>} : memref<1x1x1xf32, #tpu.memory_space<vmem>>, vector<1x1x1xf32>,
    } else {
    }
    %c0 = arith.constant 0 : index
    %c0_1 = arith.constant 0 : index
    %5 = vector.load %arg6[%c0, %c0_1] : memref<1x128xi32, #tpu.memory_space<vmem>>, vector<1x128xi32>
    %c0_i32_2 = arith.constant 0 : i32
    %6 = vector.broadcast %c0_i32_2 : i32 to vector<1x128xi32>
    %7 = arith.cmpi sge, %5, %6 : vector<1x128xi32>
    %8 = arith.extui %7 : vector<1x128xi1> to vector<1x128xi32>
    %9 = arith.sitofp %8 : vector<1x128xi32> to vector<1x128xf32>
    %c0_3 = arith.constant 0 : index
    %c0_4 = arith.constant 0 : index
    %10 = vector.load %arg7[%c0_3, %c0_4] : memref<4x128xf32, #tpu.memory_space<vmem>>, vector<4x128xf32>
    %11 = tpu.iota {dimensions = array<i32: 0>} : vector<4x128xi32>
    %c1_i32_5 = arith.constant 1 : i32
    %12 = vector.broadcast %c1_i32_5 : i32 to vector<4x128xi32>
    %13 = arith.addi %11, %12 : vector<4x128xi32>
    %14 = vector.broadcast %5 : vector<1x128xi32> to vector<4x128xi32>
    %15 = arith.cmpi eq, %14, %13 : vector<4x128xi32>
    %16 = arith.extui %15 : vector<4x128xi1> to vector<4x128xi32>
    %17 = arith.sitofp %16 : vector<4x128xi32> to vector<4x128xf32>
    %18 = math.absf %10 : vector<4x128xf32>
    %cst = arith.constant 0.000000e+00 : f32
    %19 = vector.broadcast %cst : f32 to vector<4x128xf32>
    %20 = arith.subf %19, %18 : vector<4x128xf32>
    %21 = math.exp %20 : vector<4x128xf32>
    %cst_6 = arith.constant 0.000000e+00 : f32
    %22 = vector.broadcast %cst_6 : f32 to vector<4x128xf32>
    %23 = arith.cmpf oge, %10, %22 : vector<4x128xf32>
    %cst_7 = arith.constant 1.000000e+00 : f32
    %24 = vector.broadcast %cst_7 : f32 to vector<4x128xf32>
    %25 = arith.select %23, %24, %21 : vector<4x128xi1>, vector<4x128xf32>
    %cst_8 = arith.constant 1.000000e+00 : f32
    %26 = vector.broadcast %cst_8 : f32 to vector<4x128xf32>
    %27 = arith.addf %26, %21 : vector<4x128xf32>
    %28 = arith.divf %25, %27 : vector<4x128xf32>
    %cst_9 = arith.constant 0.000000e+00 : f32
    %29 = vector.broadcast %cst_9 : f32 to vector<4x128xf32>
    %30 = arith.maximumf %10, %29 : vector<4x128xf32>
    %31 = arith.mulf %10, %17 : vector<4x128xf32>
    %32 = arith.subf %30, %31 : vector<4x128xf32>
    %33 = math.log1p %21 : vector<4x128xf32>
    %34 = arith.addf %32, %33 : vector<4x128xf32>
    %cst_10 = arith.constant 1.000000e+00 : f32
    %35 = vector.broadcast %cst_10 : f32 to vector<4x128xf32>
    %36 = arith.subf %35, %28 : vector<4x128xf32>
    %37 = arith.mulf %36, %17 : vector<4x128xf32>
    %cst_11 = arith.constant 1.000000e+00 : f32
    %38 = vector.broadcast %cst_11 : f32 to vector<4x128xf32>
    %39 = arith.subf %38, %17 : vector<4x128xf32>
    %40 = arith.mulf %28, %39 : vector<4x128xf32>
    %41 = arith.addf %37, %40 : vector<4x128xf32>
    %cst_12 = arith.constant 2.500000e-01 : f32
    %42 = vector.broadcast %cst_12 : f32 to vector<4x128xf32>
    %43 = arith.mulf %42, %17 : vector<4x128xf32>
    %cst_13 = arith.constant 1.000000e+00 : f32
    %44 = vector.broadcast %cst_13 : f32 to vector<4x128xf32>
    %45 = arith.subf %44, %17 : vector<4x128xf32>
    %cst_14 = arith.constant 7.500000e-01 : f32
    %46 = vector.broadcast %cst_14 : f32 to vector<4x128xf32>
    %47 = arith.mulf %46, %45 : vector<4x128xf32>
    %48 = arith.addf %43, %47 : vector<4x128xf32>
    %49 = arith.mulf %41, %41 : vector<4x128xf32>
    %50 = arith.mulf %48, %49 : vector<4x128xf32>
    %51 = arith.mulf %34, %50 : vector<4x128xf32>
    %cst_15 = arith.constant dense<0.000000e+00> : vector<128xf32>
    %52 = vector.multi_reduction <add>, %51, %cst_15 [0] : vector<4x128xf32> to vector<128xf32>
    %53 = vector.shape_cast %52 : vector<128xf32> to vector<1x128xf32>
    %c0_16 = arith.constant 0 : index
    %c0_17 = arith.constant 0 : index
    %c0_18 = arith.constant 0 : index
    %54 = vector.load %arg11[%c0_16, %c0_17, %c0_18] : memref<1x1x1xf32, #tpu.memory_space<vmem>>, vector<1x1x1xf32>
    %55 = arith.mulf %9, %53 : vector<1x128xf32>
    %56 = vector.shape_cast %55 : vector<1x128xf32> to vector<1x1x128xf32>
    %cst_19 = arith.constant dense<0.000000e+00> : vector<1xf32>
    %57 = vector.multi_reduction <add>, %56, %cst_19 [1, 2] : vector<1x1x128xf32> to vector<1xf32>
    %58 = vector.shape_cast %57 : vector<1xf32> to vector<1x1x1xf32>
    %59 = vector.extract %58[0, 0, 0] : f32 from vector<1x1x1xf32>
    %60 = vector.broadcast %59 : f32 to vector<1x1x1xf32>
    %61 = arith.addf %54, %60 : vector<1x1x1xf32>
    %c0_20 = arith.constant 0 : index
    %c0_21 = arith.constant 0 : index
    %c0_22 = arith.constant 0 : index
    %62 = vector.load %arg11[%c0_20, %c0_21, %c0_22] : memref<1x1x1xf32, #tpu.memory_space<vmem>>, vector<1x1x1xf32>
    tpu.vector_store %arg11[%c0_20, %c0_21, %c0_22], %61 {strides = array<i32>} : memref<1x1x1xf32, #tpu.memory_space<vmem>>, vector<1x1x1xf32>,
    %63 = arith.index_cast %1 : i32 to index
    %64 = memref.load %arg2[%63] : memref<1xi32, #tpu.memory_space<smem>>
    %c0_i32_23 = arith.constant 0 : i32
    %65 = arith.cmpi sgt, %64, %c0_i32_23 : i32
    %66 = arith.extui %65 : i1 to i32
    %c0_i32_24 = arith.constant 0 : i32
    %67 = arith.cmpi ne, %66, %c0_i32_24 : i32
    scf.if %67 {
      %c0_25 = arith.constant 0 : index
      %c0_26 = arith.constant 0 : index
      %68 = vector.load %arg5[%c0_25, %c0_26] : memref<128x1xi32, #tpu.memory_space<vmem>>, vector<128x1xi32>
      %c0_i32_27 = arith.constant 0 : i32
      %69 = vector.broadcast %c0_i32_27 : i32 to vector<128x1xi32>
      %70 = arith.cmpi sgt, %68, %69 : vector<128x1xi32>
      %71 = arith.extui %70 : vector<128x1xi1> to vector<128x1xi32>
      %72 = arith.sitofp %71 : vector<128x1xi32> to vector<128x1xf32>
      %c0_28 = arith.constant 0 : index
      %c0_29 = arith.constant 0 : index
      %73 = vector.load %arg8[%c0_28, %c0_29] : memref<128x256xf32, #tpu.memory_space<vmem>>, vector<128x256xf32>
      %74 = math.absf %73 : vector<128x256xf32>
      %cst_30 = arith.constant 0.000000e+00 : f32
      %75 = vector.broadcast %cst_30 : f32 to vector<128x256xf32>
      %76 = arith.subf %75, %74 : vector<128x256xf32>
      %77 = math.exp %76 : vector<128x256xf32>
      %cst_31 = arith.constant 0.000000e+00 : f32
      %78 = vector.broadcast %cst_31 : f32 to vector<128x256xf32>
      %79 = arith.cmpf oge, %73, %78 : vector<128x256xf32>
      %cst_32 = arith.constant 1.000000e+00 : f32
      %80 = vector.broadcast %cst_32 : f32 to vector<128x256xf32>
      %81 = arith.select %79, %80, %77 : vector<128x256xi1>, vector<128x256xf32>
      %cst_33 = arith.constant 1.000000e+00 : f32
      %82 = vector.broadcast %cst_33 : f32 to vector<128x256xf32>
      %83 = arith.addf %82, %77 : vector<128x256xf32>
      %84 = tpu.reciprocal %83 {approx = true} : vector<128x256xf32> -> vector<128x256xf32>
      %85 = arith.mulf %81, %84 : vector<128x256xf32>
      %c0_34 = arith.constant 0 : index
      %c0_35 = arith.constant 0 : index
      %86 = vector.load %arg9[%c0_34, %c0_35] : memref<128x256xf32, #tpu.memory_space<vmem>>, vector<128x256xf32>
      %87 = arith.mulf %85, %86 : vector<128x256xf32>
      %cst_36 = arith.constant dense<0.000000e+00> : vector<128xf32>
      %88 = vector.multi_reduction <add>, %87, %cst_36 [1] : vector<128x256xf32> to vector<128xf32>
      %89 = vector.shape_cast %88 : vector<128xf32> to vector<128x1xf32>
      %90 = arith.mulf %85, %85 : vector<128x256xf32>
      %91 = arith.addf %90, %86 : vector<128x256xf32>
      %cst_37 = arith.constant dense<0.000000e+00> : vector<128xf32>
      %92 = vector.multi_reduction <add>, %91, %cst_37 [1] : vector<128x256xf32> to vector<128xf32>
      %93 = vector.shape_cast %92 : vector<128xf32> to vector<128x1xf32>
      %cst_38 = arith.constant 2.000000e-03 : f32
      %94 = vector.broadcast %cst_38 : f32 to vector<128x1xf32>
      %95 = arith.addf %93, %94 : vector<128x1xf32>
      %cst_39 = arith.constant 2.000000e+00 : f32
      %96 = vector.broadcast %cst_39 : f32 to vector<128x1xf32>
      %97 = arith.mulf %96, %89 : vector<128x1xf32>
      %98 = tpu.reciprocal %95 {approx = true} : vector<128x1xf32> -> vector<128x1xf32>
      %99 = arith.mulf %97, %98 : vector<128x1xf32>
      %cst_40 = arith.constant 1.000000e+00 : f32
      %100 = vector.broadcast %cst_40 : f32 to vector<128x1xf32>
      %101 = arith.subf %100, %99 : vector<128x1xf32>
      %c0_41 = arith.constant 0 : index
      %c0_42 = arith.constant 0 : index
      %c0_43 = arith.constant 0 : index
      %102 = vector.load %arg10[%c0_41, %c0_42, %c0_43] : memref<1x1x1xf32, #tpu.memory_space<vmem>>, vector<1x1x1xf32>
      %103 = arith.mulf %72, %101 : vector<128x1xf32>
      %104 = vector.shape_cast %103 : vector<128x1xf32> to vector<1x128x1xf32>
      %cst_44 = arith.constant dense<0.000000e+00> : vector<1xf32>
      %105 = vector.multi_reduction <add>, %104, %cst_44 [1, 2] : vector<1x128x1xf32> to vector<1xf32>
      %106 = vector.shape_cast %105 : vector<1xf32> to vector<1x1x1xf32>
      %107 = vector.extract %106[0, 0, 0] : f32 from vector<1x1x1xf32>
      %108 = vector.broadcast %107 : f32 to vector<1x1x1xf32>
      %109 = arith.addf %102, %108 : vector<1x1x1xf32>
      %c0_45 = arith.constant 0 : index
      %c0_46 = arith.constant 0 : index
      %c0_47 = arith.constant 0 : index
      %110 = vector.load %arg10[%c0_45, %c0_46, %c0_47] : memref<1x1x1xf32, #tpu.memory_space<vmem>>, vector<1x1x1xf32>
      tpu.vector_store %arg10[%c0_45, %c0_46, %c0_47], %109 {strides = array<i32>} : memref<1x1x1xf32, #tpu.memory_space<vmem>>, vector<1x1x1xf32>,
    } else {
    }
    return
  }
  func.func @transform_0(%arg0: i32, %arg1: i32, %arg2: memref<1xi32, #tpu.memory_space<smem>>, %arg3: memref<1xi32, #tpu.memory_space<smem>>, %arg4: memref<1xi32, #tpu.memory_space<smem>>) -> (i32, i32) {
    %c1_i32 = arith.constant 1 : i32
    %0 = arith.muli %arg0, %c1_i32 : i32
    %1 = arith.addi %0, %arg1 : i32
    %2 = arith.index_cast %1 : i32 to index
    %3 = memref.load %arg4[%2] : memref<1xi32, #tpu.memory_space<smem>>
    %c0_i32 = arith.constant 0 : i32
    %c0_i32_0 = arith.constant 0 : i32
    return %3, %c0_i32 : i32, i32
  }
  func.func @transform_1(%arg0: i32, %arg1: i32, %arg2: memref<1xi32, #tpu.memory_space<smem>>, %arg3: memref<1xi32, #tpu.memory_space<smem>>, %arg4: memref<1xi32, #tpu.memory_space<smem>>) -> (i32, i32) {
    %c1_i32 = arith.constant 1 : i32
    %0 = arith.muli %arg0, %c1_i32 : i32
    %1 = arith.addi %0, %arg1 : i32
    %2 = arith.index_cast %1 : i32 to index
    %3 = memref.load %arg4[%2] : memref<1xi32, #tpu.memory_space<smem>>
    %c0_i32 = arith.constant 0 : i32
    %c0_i32_0 = arith.constant 0 : i32
    return %c0_i32, %3 : i32, i32
  }
  func.func @transform_2(%arg0: i32, %arg1: i32, %arg2: memref<1xi32, #tpu.memory_space<smem>>, %arg3: memref<1xi32, #tpu.memory_space<smem>>, %arg4: memref<1xi32, #tpu.memory_space<smem>>) -> (i32, i32) {
    %c1_i32 = arith.constant 1 : i32
    %0 = arith.muli %arg0, %c1_i32 : i32
    %1 = arith.addi %0, %arg1 : i32
    %2 = arith.index_cast %1 : i32 to index
    %3 = memref.load %arg4[%2] : memref<1xi32, #tpu.memory_space<smem>>
    %c0_i32 = arith.constant 0 : i32
    %c0_i32_0 = arith.constant 0 : i32
    return %c0_i32, %3 : i32, i32
  }
  func.func @transform_3(%arg0: i32, %arg1: i32, %arg2: memref<1xi32, #tpu.memory_space<smem>>, %arg3: memref<1xi32, #tpu.memory_space<smem>>, %arg4: memref<1xi32, #tpu.memory_space<smem>>) -> (i32, i32) {
    %c1_i32 = arith.constant 1 : i32
    %0 = arith.muli %arg0, %c1_i32 : i32
    %1 = arith.addi %0, %arg1 : i32
    %2 = arith.index_cast %1 : i32 to index
    %3 = memref.load %arg3[%2] : memref<1xi32, #tpu.memory_space<smem>>
    %c0_i32 = arith.constant 0 : i32
    %c0_i32_0 = arith.constant 0 : i32
    return %3, %c0_i32 : i32, i32
  }
  func.func @transform_4(%arg0: i32, %arg1: i32, %arg2: memref<1xi32, #tpu.memory_space<smem>>, %arg3: memref<1xi32, #tpu.memory_space<smem>>, %arg4: memref<1xi32, #tpu.memory_space<smem>>) -> (i32, i32) {
    %c1_i32 = arith.constant 1 : i32
    %0 = arith.muli %arg0, %c1_i32 : i32
    %1 = arith.addi %0, %arg1 : i32
    %2 = arith.index_cast %1 : i32 to index
    %3 = memref.load %arg3[%2] : memref<1xi32, #tpu.memory_space<smem>>
    %c0_i32 = arith.constant 0 : i32
    %c0_i32_0 = arith.constant 0 : i32
    return %3, %c0_i32 : i32, i32
  }
  func.func @transform_5(%arg0: i32, %arg1: i32, %arg2: memref<1xi32, #tpu.memory_space<smem>>, %arg3: memref<1xi32, #tpu.memory_space<smem>>, %arg4: memref<1xi32, #tpu.memory_space<smem>>) -> (i32, i32, i32) {
    %c0_i32 = arith.constant 0 : i32
    %c0_i32_0 = arith.constant 0 : i32
    %c0_i32_1 = arith.constant 0 : i32
    return %arg0, %c0_i32, %c0_i32_0 : i32, i32, i32
  }
  func.func @transform_6(%arg0: i32, %arg1: i32, %arg2: memref<1xi32, #tpu.memory_space<smem>>, %arg3: memref<1xi32, #tpu.memory_space<smem>>, %arg4: memref<1xi32, #tpu.memory_space<smem>>) -> (i32, i32, i32) {
    %c0_i32 = arith.constant 0 : i32
    %c0_i32_0 = arith.constant 0 : i32
    %c0_i32_1 = arith.constant 0 : i32
    return %arg0, %c0_i32, %c0_i32_0 : i32, i32, i32
  }
}

</mosaic_0001>

<bundles_post_ra>
// kernel: tpu_custom_call.1
= control target key start
LH: loop header
LB: loop body
LE: loop exit
PB: predicated region body
PF: predicated region fallthrough
CT: control target
= control target key end

     0   :  { %18 = vsyncpa [#allocation7], 0  ;;  %s1867_s0 = inlined_call_operand.<no memory space> [shape: s32[1], index: 0, kind: input, shape index: {}]   ;;  %s1868_s1 = inlined_call_operand.<no memory space> [shape: s32[1], index: 1, kind: input, shape index: {}]   ;;  %s1869_s2 = inlined_call_operand.<no memory space> [shape: s32[1], index: 2, kind: input, shape index: {}]   ;;  %s1870_s3 = inlined_call_operand.vmem [shape: s32[128,1], index: 3, kind: input, shape index: {}]   ;;  %s1871_s4 = inlined_call_operand.vmem [shape: s32[1,128], index: 4, kind: input, shape index: {}]   ;;  %s1872_s5 = inlined_call_operand.vmem [shape: f32[4,128], index: 5, kind: input, shape index: {}]   ;;  %s1873_s6 = inlined_call_operand.hbm [shape: f32[128,256], index: 6, kind: input, shape index: {}]   ;;  %s1874_s7 = inlined_call_operand.hbm [shape: f32[128,256], index: 7, kind: input, shape index: {}]   ;;  %s1875_s8 = inlined_call_operand.hbm [shape: f32[1,1,1], index: 8, kind: output, shape index: {0}]   ;;  %s1876_s9 = inlined_call_operand.hbm [shape: f32[1,1,1], index: 9, kind: output, shape index: {1}]  }
   0x1   :  { %19 = vsyncpa [#allocation10], 0 }
   0x2   :  { %20 = vsyncpa [#allocation8], 0 }
   0x3   :  { %21 = vsyncpa [#allocation13], 0  ;;  %s1057_s11 = sshll.u32 %s1868_s1, 12  ;;  %s1338_s15 = smov [#allocation6]  }
   0x4   :  { %s63_s14 = scalar_lea.hbm %s1873_s6, %s1057_s11  ;;  %s64_s16 = sshll.u32 %s1338_s15, 4  ;;  %s65_s16 = int_to_ptr.vmem [resolvable:$true] %s64_s16 }
   0x5   :  { %s1238_s17 = scalar_lea.hbm %s63_s14, 4096  ;;  %s1240_s20 = scalar_lea.hbm %s1873_s6, 4096 }
   0x6   :  { %p1239_p0 = scmp.ne.s32.totalorder %s63_s14, %s1238_s17  ;;  %p1241_p1 = scmp.lt.u32.totalorder %s63_s14, %s1873_s6 }
   0x7   :  { %p1242_p2 = scmp.lt.u32.totalorder %s1240_s20, %s1238_s17  ;;  %p1244_p4 = scmp.lt.u32.totalorder %s1238_s17, %s63_s14 }
   0x9   :  { %p1243_p3 = por %p1242_p2, %p1241_p1 }
   0xb   :  { %p1245_p5 = por %p1244_p4, %p1243_p3 }
   0xd   :  { %p1246_p6 = pnand %p1245_p5, %p1239_p0 }
   0xf   :  { %1249 = shalt.err (!%p1246_p6)
}
  0x10   :  { %s1250_s1 = scalar_lea.vmem %s65_s16, 4096  ;;  %p1255_p8 = scmp.lt.s32.totalorder %s65_s16, %s65_s16 }
  0x11   :  { %p1251_p7 = scmp.ne.s32.totalorder %s65_s16, %s1250_s1  ;;  %p1256_p9 = scmp.lt.s32.totalorder %s1250_s1, %s1250_s1 }
  0x13   :  { %p1257_p10 = por %p1256_p9, %p1255_p8 }
  0x15   :  { %p1258_p11 = pnand %p1257_p10, %p1251_p7 }
  0x17   :  { %1261 = shalt.err (!%p1258_p11)
}
  0x18   :  { %s1339_s23 = smov 256   ;;  %s1340_s24 = smov 16  }
  0x19   :  { %70 = dma.hbm_to_vmem [thread:$0]  %s63_s14, 4096, %s65_s16, [#allocation7], %s1339_s23, %s1339_s23, %s1340_s24  }
  0x1a   :  { %s81_s6 = scalar_lea.hbm %s1874_s7, %s1057_s11  ;;  %s1341_s27 = smov [#allocation9]  }
  0x1b   :  { %s82_s28 = sshll.u32 %s1341_s27, 4  ;;  %s1262_s29 = scalar_lea.hbm %s81_s6, 4096  ;;  %s83_s28 = int_to_ptr.vmem [resolvable:$true] %s82_s28 }
  0x1c   :  { %p1263_p12 = scmp.ne.s32.totalorder %s81_s6, %s1262_s29  ;;  %s1264_s12 = scalar_lea.hbm %s1874_s7, 4096 }
  0x1d   :  { %p1265_p13 = scmp.lt.u32.totalorder %s81_s6, %s1874_s7  ;;  %p1266_p0 = scmp.lt.u32.totalorder %s1264_s12, %s1262_s29 }
  0x1e   :  { %p1268_p2 = scmp.lt.u32.totalorder %s1262_s29, %s81_s6 }
  0x1f   :  { %p1267_p1 = por %p1266_p0, %p1265_p13 }
  0x21   :  { %p1269_p3 = por %p1268_p2, %p1267_p1 }
  0x23   :  { %p1270_p4 = pnand %p1269_p3, %p1263_p12 }
  0x25   :  { %1273 = shalt.err (!%p1270_p4)
}
  0x26   :  { %s1274_s11 = scalar_lea.vmem %s83_s28, 4096  ;;  %p1279_p6 = scmp.lt.s32.totalorder %s83_s28, %s83_s28 }
  0x27   :  { %p1275_p5 = scmp.ne.s32.totalorder %s83_s28, %s1274_s11  ;;  %p1280_p7 = scmp.lt.s32.totalorder %s1274_s11, %s1274_s11 }
  0x29   :  { %p1281_p8 = por %p1280_p7, %p1279_p6 }
  0x2b   :  { %p1282_p9 = pnand %p1281_p8, %p1275_p5 }
  0x2d   :  { %1285 = shalt.err (!%p1282_p9)
}
  0x2e   :  { %88 = dma.hbm_to_vmem [thread:$0]  %s81_s6, 4096, %s83_s28, [#allocation10], %s1339_s23, %s1339_s23, %s1340_s24  }
  0x2f   :  { %1330 = dma.done.wait [#allocation7], 4096  }
  0x30   :  { %1331 = vsyncadd [#allocation7], 4294963200 }
  0x31   :  { %1332 = dma.done.wait [#allocation10], 4096  }
  0x32   :  { %1333 = vsyncadd [#allocation10], 4294963200  ;;  %s1034_s16 = sshll.u32 %s1869_s2, 4  ;;  %p125_p10 = scmp.lt.s32.totalorder %s1869_s2, 0  ;;  %vm149_vm0 = vcmask 0   ;;  %v1342_v0 = vmov 0.0   ;;  %v157_v5 = vlaneseq }
  0x33   :  { %p116_p11 = scmp.lt.s32.totalorder %s1034_s16, 15  ;;  %150 = vst.msk [vmem:[#allocation11] sm:$0x1] %vm149_vm0, %v1342_v0  ;;  %151 = vst.msk [vmem:[#allocation12] sm:$0x1] %vm149_vm0, %v1342_v0  ;;  %vm200_vm4 = vcmask 1043456  }
  0x34   :  { %s1878_s2 = smov (!%p125_p10, %s1869_s2), 0  ;;  %v158_v6 = vshrl.u32 %v157_v5, 7  ;;  %vm210_vm6 = vcmask 1040384   ;;  %p1039_p12 = scmp.le.s32.totalorder %s1867_s0, 0 }
  0x35   :  { %s1880_s16 = smov (!%p116_p11, %s1034_s16), 15  ;;  %s1036_s21 = sshll.u32 %s1878_s2, 2  ;;  %v1443_v59 = vld [vmem:[#allocation6 + $0x10] sm:$0xff] (!%p1039_p12)  ;;  %v1445_v60 = vld [vmem:[#allocation6 + $0x18] sm:$0xff] (!%p1039_p12)  ;;  %v1449_v63 = vld [vmem:[#allocation6] sm:$0xff] (!%p1039_p12) }
  0x36   :  { %s1035_s22 = sshll.u32 %s1880_s16, 3  ;;  %s135_s24 = scalar_lea.vmem %s1872_s5, %s1036_s21  ;;  %v162_v7 = vsub.s32 0, %v158_v6  ;;  %v159_v11 = vadd.s32 1, %v158_v6  ;;  %v328_v61 = vand.u32 (!%p1039_p12), 2147483647, %v1443_v59  ;;  %v1455_v5 = vld [vmem:[#allocation6 + $0x20] sm:$0xff] (!%p1039_p12) }
  0x37   :  { %s1434_s6 = scalar_lea.vmem %s1870_s3, %s1035_s22  ;;  %v156_v1 = vld [vmem:[%s135_s24] sm:$0xf]  ;;  %s127_s29 = scalar_lea.vmem %s1871_s4, %s1878_s2  ;;  %v329_v62 = vand.u32 (!%p1039_p12), 2147483647, %v1445_v60  ;;  %vm456_vm7 = vcmp.ge.f32.partialorder (!%p1039_p12), %v1443_v59, 0.0  ;;  %vm457_vm8 = vcmp.ge.f32.partialorder (!%p1039_p12), %v1445_v60, 0.0 }
  0x38   :  { %v167_v2 = vand.u32 2147483647, %v156_v1  ;;  %v152_v8 = vld [vmem:[%s127_s29] sm:$0x1]  ;;  %vm171_vm2 = vcmp.ge.f32.partialorder %v156_v1, 0.0  ;;  %v176_v22 = vmax.f32 %v156_v1, 0.0 }
  0x39   :  { %v163_v12 = vrot.slane %v152_v8, %v162_v7  ;;  %vm153_vm5 = vcmp.ge.s32.totalorder %v152_v8, 0  ;;  %vm454_vm9 = vcmp.ge.f32.partialorder (!%p1039_p12), %v1449_v63, 0.0  ;;  %vm458_vm11 = vcmp.ge.f32.partialorder (!%p1039_p12), %v1455_v5, 0.0 }
  0x3a   :  { %v168_v3 = vsub.f32 0.0, %v167_v2  ;;  %v1037_v45 = vsel %vm153_vm5, 1.0, %v1342_v0  ;;  %v208_v56 = vld [vmem:[#allocation12] sm:$0x1]  ;;  %v361_v2 = vsub.f32 (!%p1039_p12), 0.0, %v329_v62 }
  0x3b   :  { %vm164_vm1 = vcmp.eq.s32.totalorder %v163_v12, %v159_v11  ;;  %v330_v11 = vand.u32 (!%p1039_p12), 2147483647, %v1455_v5 }
  0x3c   :  { %v169_v4 = vmul.f32 1.442695, %v168_v3  ;;  %v1038_v14 = vsel %vm164_vm1, 1.0, %v1342_v0  ;;  %v1451_v0 = vld [vmem:[#allocation6 + $0x8] sm:$0xff] (!%p1039_p12)  ;;  %v326_v3 = vand.u32 (!%p1039_p12), 2147483647, %v1449_v63 }
  0x3d   :  { %v191_v18 = vsub.f32 1.0, %v1038_v14  ;;  %v177_v23 = vmul.f32 %v1038_v14, %v156_v1  ;;  %v194_v26 = vmul.f32 0.25, %v1038_v14  ;;  %v360_v1 = vsub.f32 (!%p1039_p12), 0.0, %v328_v61 }
  0x3e   :  { %1072 = vpow2.f32 %v169_v4  ;;  %v327_v4 = vand.u32 (!%p1039_p12), 2147483647, %v1451_v0  ;;  %v396_v7 = vmul.f32 (!%p1039_p12), 1.442695, %v361_v2  ;;  %v358_v8 = vsub.f32 (!%p1039_p12), 0.0, %v326_v3  ;;  %v1496_v2 = vld [vmem:[#allocation6 + $0x88] sm:$0xff] (!%p1039_p12) }
  0x3f   :  { %v195_v29 = vmul.f32 0.75, %v191_v18  ;;  %v178_v30 = vsub.f32 %v176_v22, %v177_v23  ;;  %v394_v6 = vmul.f32 (!%p1039_p12), 1.442695, %v360_v1  ;;  %v1467_v22 = vld [vmem:[#allocation6 + $0x40] sm:$0xff] (!%p1039_p12)  ;;  %v1469_v23 = vld [vmem:[#allocation6 + $0x48] sm:$0xff] (!%p1039_p12)  ;;  %vm455_vm10 = vcmp.ge.f32.partialorder (!%p1039_p12), %v1451_v0, 0.0 }
  0x40   :  { %v390_v12 = vmul.f32 (!%p1039_p12), 1.442695, %v358_v8  ;;  %vm462_vm15 = vcmp.ge.f32.partialorder (!%p1039_p12), %v1467_v22, 0.0  ;;  %vm463_vm1 = vcmp.ge.f32.partialorder (!%p1039_p12), %v1469_v23, 0.0 }
  0x41   :  { %v196_v34 = vadd.f32 %v195_v29, %v194_v26 }
  0x48   :  { %v1073_v9 = vpop.eup %1072 }
  0x49   :  { %v173_v10 = vadd.f32 1.0, %v1073_v9  ;;  %v182_v13 = vmul.f32 -0.5, %v1073_v9  ;;  %v172_v15 = vsel %vm171_vm2, 1.0, %v1073_v9  ;;  %v185_v17 = vand.u32 2147483647, %v1073_v9 }
  0x4b   :  { %1074 = vrcp.f32 %v173_v10  ;;  %v183_v16 = vadd.f32 1.0, %v182_v13  ;;  %vm186_vm3 = vcmp.lt.f32.partialorder %v185_v17, 0.0004427343  ;;  %v1463_v17 = vld [vmem:[#allocation6 + $0x38] sm:$0xff] (!%p1039_p12) }
  0x4c   :  { %1076 = vlog2.f32 %v173_v10  ;;  %v1457_v10 = vld [vmem:[#allocation6 + $0x28] sm:$0xff] (!%p1039_p12)  ;;  %vm461_vm14 = vcmp.ge.f32.partialorder (!%p1039_p12), %v1463_v17, 0.0 }
  0x4d   :  { %v184_v25 = vmul.f32 %v1073_v9, %v183_v16  ;;  %v359_v9 = vsub.f32 (!%p1039_p12), 0.0, %v327_v4  ;;  %1078 = vpow2.f32 (!%p1039_p12), %v394_v6  ;;  %v1461_v16 = vld [vmem:[#allocation6 + $0x30] sm:$0xff] (!%p1039_p12)  ;;  %vm459_vm12 = vcmp.ge.f32.partialorder (!%p1039_p12), %v1457_v10, 0.0 }
  0x4e   :  { %1080 = vpow2.f32 (!%p1039_p12), %v396_v7  ;;  %vm460_vm13 = vcmp.ge.f32.partialorder (!%p1039_p12), %v1461_v16, 0.0 }
  0x4f   :  { %v392_v13 = vmul.f32 (!%p1039_p12), 1.442695, %v359_v9  ;;  %1082 = vpow2.f32 (!%p1039_p12), %v390_v12 }
  0x51   :  { %1084 = vpow2.f32 (!%p1039_p12), %v392_v13 }
  0x55   :  { %v1075_v19 = vpop.eup %1074 }
  0x56   :  { %v1077_v20 = vpop.eup %1076  ;;  %v175_v21 = vmul.f32 %v1075_v19, %v172_v15  ;;  %v362_v15 = vsub.f32 (!%p1039_p12), 0.0, %v330_v11  ;;  %v332_v19 = vand.u32 (!%p1039_p12), 2147483647, %v1461_v16  ;;  %v1534_v16 = vld [vmem:[#allocation9 + $0x8] sm:$0xff] (!%p1039_p12) }
  0x57   :  { %v181_v24 = vmul.f32 0.6931472, %v1077_v20  ;;  %v333_v20 = vand.u32 (!%p1039_p12), 2147483647, %v1463_v17 }
  0x58   :  { %v189_v27 = vsub.f32 1.0, %v175_v21  ;;  %v192_v28 = vmul.f32 %v191_v18, %v175_v21  ;;  %v398_v21 = vmul.f32 (!%p1039_p12), 1.442695, %v362_v15 }
  0x59   :  { %v187_v32 = vsel %vm186_vm3, %v184_v25, %v181_v24  ;;  %v364_v25 = vsub.f32 (!%p1039_p12), 0.0, %v332_v19  ;;  %v365_v26 = vsub.f32 (!%p1039_p12), 0.0, %v333_v20 }
  0x5a   :  { %v190_v31 = vmul.f32 %v1038_v14, %v189_v27  ;;  %v188_v35 = vadd.f32 %v187_v32, %v178_v30  ;;  %v331_v14 = vand.u32 (!%p1039_p12), 2147483647, %v1457_v10  ;;  %v334_v27 = vand.u32 (!%p1039_p12), 2147483647, %v1467_v22  ;;  %v1473_v32 = vld [vmem:[#allocation6 + $0x50] sm:$0xff] (!%p1039_p12) }
  0x5b   :  { %1086 = vpow2.f32 (!%p1039_p12), %v398_v21  ;;  %v402_v29 = vmul.f32 (!%p1039_p12), 1.442695, %v364_v25  ;;  %v404_v30 = vmul.f32 (!%p1039_p12), 1.442695, %v365_v26  ;;  %v1509_v25 = vld [vmem:[#allocation6 + $0x90] sm:$0xff] (!%p1039_p12)  ;;  %vm464_vm2 = vcmp.ge.f32.partialorder (!%p1039_p12), %v1473_v32, 0.0 }
  0x5c   :  { %v193_v33 = vadd.f32 %v192_v28, %v190_v31  ;;  %v363_v18 = vsub.f32 (!%p1039_p12), 0.0, %v331_v14  ;;  %v335_v28 = vand.u32 (!%p1039_p12), 2147483647, %v1469_v23  ;;  %v366_v31 = vsub.f32 (!%p1039_p12), 0.0, %v334_v27  ;;  %v1511_v26 = vld [vmem:[#allocation9 + $0x10] sm:$0xff] (!%p1039_p12) }
  0x5d   :  { %v343_v14 = vand.u32 (!%p1039_p12), 2147483647, %v1496_v2 }
  0x5e   :  { %v197_v36 = vmul.f32 %v193_v33, %v193_v33  ;;  %v400_v24 = vmul.f32 (!%p1039_p12), 1.442695, %v363_v18  ;;  %v367_v33 = vsub.f32 (!%p1039_p12), 0.0, %v335_v28 }
  0x60   :  { %v198_v37 = vmul.f32 %v197_v36, %v196_v34  ;;  %1088 = vpow2.f32 (!%p1039_p12), %v400_v24  ;;  %v1475_v34 = vld [vmem:[#allocation6 + $0x58] sm:$0xff] (!%p1039_p12)  ;;  %v406_v36 = vmul.f32 (!%p1039_p12), 1.442695, %v366_v31 }
  0x61   :  { %1090 = vpow2.f32 (!%p1039_p12), %v402_v29  ;;  %v1517_v29 = vld [vmem:[#allocation6 + $0x98] sm:$0xff] (!%p1039_p12)  ;;  %vm465_vm3 = vcmp.ge.f32.partialorder (!%p1039_p12), %v1475_v34, 0.0 }
  0x62   :  { %v199_v38 = vmul.f32 %v198_v37, %v188_v35  ;;  %v336_v35 = vand.u32 (!%p1039_p12), 2147483647, %v1473_v32  ;;  %v337_v37 = vand.u32 (!%p1039_p12), 2147483647, %v1475_v34  ;;  %1092 = vpow2.f32 (!%p1039_p12), %v404_v30  ;;  %v1521_v31 = vld [vmem:[#allocation9 + $0x18] sm:$0xff] (!%p1039_p12) }
  0x63   :  { %1094 = vpow2.f32 (!%p1039_p12), %v406_v36 }
  0x64   :  { %v201_v39 = vsel %vm200_vm4, %v199_v38, 0.0  ;;  %v408_v38 = vmul.f32 (!%p1039_p12), 1.442695, %v367_v33 }
  0x65   :  { %v202_v40 = vrot.slane %v201_v39, 4 }
  0x66   :  { %1096 = vpow2.f32 (!%p1039_p12), %v408_v38  ;;  %v344_v38 = vand.u32 (!%p1039_p12), 2147483647, %v1509_v25 }
  0x67   :  { %v203_v41 = vadd.f32 %v202_v40, %v201_v39  ;;  %v368_v39 = vsub.f32 (!%p1039_p12), 0.0, %v336_v35  ;;  %v1079_v40 = vpop.eup (!%p1039_p12), %1078  ;;  %v375_v35 = vsub.f32 (!%p1039_p12), 0.0, %v343_v14 }
  0x68   :  { %v488_v7 = vsel (!%p1039_p12), %vm456_vm7, 1.0, %v1079_v40  ;;  %vm471_vm7 = vcmp.ge.f32.partialorder (!%p1039_p12), %v1496_v2, 0.0 }
  0x69   :  { %v204_v42 = vrot.slane %v203_v41, 2 }
  0x6b   :  { %v205_v43 = vadd.f32 %v204_v42, %v203_v41  ;;  %v1479_v41 = vld [vmem:[#allocation6 + $0x70] sm:$0xff] (!%p1039_p12)  ;;  %v1081_v42 = vpop.eup (!%p1039_p12), %1080 }
  0x6c   :  { %v489_v12 = vsel (!%p1039_p12), %vm457_vm8, 1.0, %v1081_v42  ;;  %vm468_vm4 = vcmp.ge.f32.partialorder (!%p1039_p12), %v1479_v41, 0.0  ;;  %vm472_vm8 = vcmp.ge.f32.partialorder (!%p1039_p12), %v1509_v25, 0.0 }
  0x6d   :  { %v206_v44 = vrot.slane %v205_v43, 1 }
  0x6f   :  { %v207_v46 = vadd.f32 %v206_v44, %v205_v43  ;;  %v520_v43 = vadd.f32 (!%p1039_p12), 1.0, %v1079_v40  ;;  %v1482_v44 = vld [vmem:[#allocation6 + $0x78] sm:$0xff] (!%p1039_p12) }
  0x70   :  { %vm469_vm5 = vcmp.ge.f32.partialorder (!%p1039_p12), %v1482_v44, 0.0 }
  0x71   :  { %v209_v47 = vmul.f32 %v1037_v45, %v207_v46  ;;  %v1083_v45 = vpop.eup (!%p1039_p12), %1082  ;;  %v521_v46 = vadd.f32 (!%p1039_p12), 1.0, %v1081_v42  ;;  %1098 = vrcp.f32 (!%p1039_p12), %v520_v43  ;;  %v345_v43 = vand.u32 (!%p1039_p12), 2147483647, %v1517_v29 }
  0x72   :  { %v486_v18 = vsel (!%p1039_p12), %vm454_vm9, 1.0, %v1083_v45  ;;  %vm473_vm9 = vcmp.ge.f32.partialorder (!%p1039_p12), %v1517_v29, 0.0 }
  0x73   :  { %v211_v48 = vsel %vm210_vm6, %v209_v47, 0.0  ;;  %v369_v47 = vsub.f32 (!%p1039_p12), 0.0, %v337_v37  ;;  %1100 = vrcp.f32 (!%p1039_p12), %v521_v46  ;;  %v1527_v37 = vld [vmem:[#allocation9] sm:$0xff] (!%p1039_p12)  ;;  %v1559_v23 = vsub.f32 (!%p1039_p12), 0.0, %v345_v43 }
  0x74   :  { %212 = vadd.xlane.f32.xlu0 %v211_v48  ;;  %v1085_v48 = vpop.eup (!%p1039_p12), %1084 }
  0x75   :  { %v487_v59 = vsel (!%p1039_p12), %vm455_vm10, 1.0, %v1085_v48 }
 0x101   :  { %v213_v49 = vpop.xlane.xlu0 %212 }
 0x102   :  { %v214_v50 = vrot.slane %v213_v49, 4 }
 0x104   :  { %v215_v51 = vadd.f32 %v214_v50, %v213_v49  ;;  %v518_v49 = vadd.f32 (!%p1039_p12), 1.0, %v1083_v45  ;;  %v410_v50 = vmul.f32 (!%p1039_p12), 1.442695, %v368_v39 }
 0x106   :  { %v216_v52 = vrot.slane %v215_v51, 2  ;;  %1102 = vrcp.f32 (!%p1039_p12), %v518_v49 }
 0x108   :  { %v217_v53 = vadd.f32 %v216_v52, %v215_v51  ;;  %v340_v51 = vand.u32 (!%p1039_p12), 2147483647, %v1479_v41  ;;  %v1487_v52 = vld [vmem:[#allocation6 + $0x80] sm:$0xff] (!%p1039_p12) }
 0x109   :  { %v342_v61 = vand.u32 (!%p1039_p12), 2147483647, %v1487_v52  ;;  %vm470_vm6 = vcmp.ge.f32.partialorder (!%p1039_p12), %v1487_v52, 0.0 }
 0x10a   :  { %v218_v54 = vrot.slane %v217_v53, 1  ;;  %v372_v1 = vsub.f32 (!%p1039_p12), 0.0, %v340_v51  ;;  %v618_v51 = vld [vmem:[#allocation9 + $0x20] sm:$0xff] (!%p1039_p12) }
 0x10b   :  { %v374_v9 = vsub.f32 (!%p1039_p12), 0.0, %v342_v61 }
 0x10c   :  { %v219_v55 = vadd.f32 %v218_v54, %v217_v53  ;;  %v519_v53 = vadd.f32 (!%p1039_p12), 1.0, %v1085_v48  ;;  %v341_v54 = vand.u32 (!%p1039_p12), 2147483647, %v1482_v44  ;;  %v418_v20 = vmul.f32 (!%p1039_p12), 1.442695, %v372_v1  ;;  %v1544_v48 = vld [vmem:[#allocation6 + $0xa0] sm:$0xff] (!%p1039_p12) }
 0x10d   :  { %v422_v28 = vmul.f32 (!%p1039_p12), 1.442695, %v374_v9  ;;  %v1555_v1 = vsub.f32 (!%p1039_p12), 0.0, %v344_v38  ;;  %vm474_vm10 = vcmp.ge.f32.partialorder (!%p1039_p12), %v1544_v48, 0.0 }
 0x10e   :  { %1060 = vpush %v219_v55  ;;  %v1087_v55 = vpop.eup (!%p1039_p12), %1086  ;;  %1104 = vrcp.f32 (!%p1039_p12), %v519_v53  ;;  %v373_v4 = vsub.f32 (!%p1039_p12), 0.0, %v341_v54 }
 0x10f   :  { %1106 = vpow2.f32 (!%p1039_p12), %v410_v50  ;;  %v490_v27 = vsel (!%p1039_p12), %vm458_vm11, 1.0, %v1087_v55  ;;  %v426_v32 = vmul.f32 (!%p1039_p12), 1.442695, %v1555_v1 }
 0x110   :  { %v420_v24 = vmul.f32 (!%p1039_p12), 1.442695, %v373_v4 }
 0x13d   :  { %229 = sbr.rel (%p1039_p12) target bundleno = 796 (0x31c), region = 37 }
 0x13f   :  { %s1061_s2 = spop %1060 }
 0x140   :  { %v221_v57 = vstv %s1061_s2 }
 0x141   :  { %v222_v58 = vadd.f32 %v221_v57, %v208_v56  ;;  %v1089_v56 = vpop.eup (!%p1039_p12), %1088  ;;  %v522_v57 = vadd.f32 (!%p1039_p12), 1.0, %v1087_v55  ;;  %v1550_v55 = vmul.f32 (!%p1039_p12), 1.442695, %v375_v35 }
 0x142   :  { %v523_v62 = vadd.f32 (!%p1039_p12), 1.0, %v1089_v56  ;;  %v1091_v3 = vpop.eup (!%p1039_p12), %1090  ;;  %v491_v63 = vsel (!%p1039_p12), %vm459_vm12, 1.0, %v1089_v56  ;;  %v1552_v56 = vld [vmem:[#allocation6 + $0xa8] sm:$0xff] (!%p1039_p12) }
 0x143   :  { %224 = vst.msk [vmem:[#allocation12] sm:$0x1] %vm149_vm0, %v222_v58  ;;  %v412_v58 = vmul.f32 (!%p1039_p12), 1.442695, %v369_v47  ;;  %1108 = vrcp.f32 (!%p1039_p12), %v522_v57  ;;  %v1093_v6 = vpop.eup (!%p1039_p12), %1092  ;;  %v524_v8 = vadd.f32 (!%p1039_p12), 1.0, %v1091_v3  ;;  %v492_v33 = vsel (!%p1039_p12), %vm460_vm13, 1.0, %v1091_v3 }
 0x144   :  { %1110 = vrcp.f32 %v523_v62  ;;  %v1095_v11 = vpop.eup %1094  ;;  %v525_v13 = vadd.f32 1.0, %v1093_v6  ;;  %v493_v10 = vsel %vm461_vm14, 1.0, %v1093_v6  ;;  %v619_v62 = vld [vmem:[#allocation9 + $0x28] sm:$0xff]  ;;  %v346_v6 = vand.u32 2147483647, %v1544_v48 }
 0x145   :  { %1112 = vpow2.f32 %v412_v58  ;;  %v1097_v15 = vpop.eup %1096  ;;  %v526_v19 = vadd.f32 1.0, %v1095_v11  ;;  %v494_v47 = vsel %vm462_vm15, 1.0, %v1095_v11  ;;  %vm475_vm11 = vcmp.ge.f32.partialorder %v1552_v56, 0.0 }
 0x146   :  { %1114 = vrcp.f32 %v524_v8  ;;  %v527_v21 = vadd.f32 1.0, %v1097_v15  ;;  %v1099_v60 = vpop.eup %1098  ;;  %v495_v53 = vsel %vm463_vm1, 1.0, %v1097_v15 }
 0x147   :  { %1116 = vrcp.f32 %v525_v13  ;;  %v1101_v0 = vpop.eup %1100  ;;  %v1519_v30 = vmul.f32 %v1099_v60, %v488_v7  ;;  %v347_v13 = vand.u32 2147483647, %v1552_v56 }
 0x148   :  { %1118 = vrcp.f32 %v526_v19  ;;  %v1103_v36 = vpop.eup %1102  ;;  %v1525_v5 = vmul.f32 %v1101_v0, %v489_v12  ;;  %v620_v12 = vld [vmem:[#allocation9 + $0x30] sm:$0xff] }
 0x149   :  { %1120 = vrcp.f32 %v527_v21  ;;  %v1105_v39 = vpop.eup %1104  ;;  %v648_v40 = vmul.f32 %v1511_v26, %v1519_v30  ;;  %v582_v42 = vmul.f32 %v1103_v36, %v486_v18 }
 0x14a   :  { %1122 = vpow2.f32 %v418_v20  ;;  %v1537_v45 = vpop.eup %1106  ;;  %v649_v46 = vmul.f32 %v1521_v31, %v1525_v5  ;;  %v583_v17 = vmul.f32 %v1105_v39, %v487_v59  ;;  %v621_v20 = vld [vmem:[#allocation9 + $0x38] sm:$0xff]  ;;  %v1565_v39 = vld [vmem:[#allocation9 + $0x40] sm:$0xff] }
 0x14b   :  { %1124 = vpow2.f32 %v420_v24  ;;  %v646_v50 = vmul.f32 %v1527_v37, %v582_v42  ;;  %v528_v54 = vadd.f32 1.0, %v1537_v45 }
 0x14c   :  { %1126 = vpow2.f32 %v422_v28  ;;  %v681_v57 = vadd.f32 %v649_v46, %v648_v40  ;;  %v647_v58 = vmul.f32 %v1534_v16, %v583_v17  ;;  %v1567_v40 = vld [vmem:[#allocation9 + $0x48] sm:$0xff] }
 0x14d   :  { %v1109_v49 = vpop.eup %1108  ;;  %1128 = vrcp.f32 %v528_v54 }
 0x14e   :  { %v1111_v22 = vpop.eup %1110  ;;  %v586_v61 = vmul.f32 %v1109_v49, %v490_v27  ;;  %682 = vadd.xlane.f32.xlu0 %v681_v57  ;;  %v678_v8 = vadd.f32 %v647_v58, %v646_v50  ;;  %v726_v27 = vmul.f32 %v582_v42, %v582_v42 }
 0x14f   :  { %v1557_v3 = vpop.eup %1112  ;;  %v587_v4 = vmul.f32 %v1111_v22, %v491_v63  ;;  %v727_v63 = vmul.f32 %v583_v17, %v583_v17 }
 0x150   :  { %v1115_v7 = vpop.eup %1114  ;;  %v650_v9 = vmul.f32 %v618_v51, %v586_v61  ;;  %v730_v11 = vmul.f32 %v586_v61, %v586_v61  ;;  %v529_v59 = vadd.f32 1.0, %v1557_v3  ;;  %679 = vadd.xlane.f32.xlu1 %v678_v8  ;;  %v497_v1 = vsel %vm465_vm3, 1.0, %v1557_v3  ;;  %v1605_v3 = vld [vmem:[#allocation6 + $0xb0] sm:$0xff] }
 0x151   :  { %v1117_v14 = vpop.eup %1116  ;;  %v651_v15 = vmul.f32 %v619_v62, %v587_v4  ;;  %v731_v18 = vmul.f32 %v587_v4, %v587_v4  ;;  %v588_v19 = vmul.f32 %v1115_v7, %v492_v33  ;;  %v729_v4 = vmul.f32 %v1525_v5, %v1525_v5 }
 0x152   :  { %v1119_v21 = vpop.eup %1118  ;;  %v762_v24 = vadd.f32 %v730_v11, %v618_v51  ;;  %v589_v60 = vmul.f32 %v1117_v14, %v493_v10  ;;  %1130 = vrcp.f32 %v529_v59  ;;  %v728_v51 = vmul.f32 %v1519_v30, %v1519_v30  ;;  %v1607_v59 = vld [vmem:[#allocation6 + $0xb8] sm:$0xff] }
 0x153   :  { %v1121_v28 = vpop.eup %1120  ;;  %v684_v0 = vadd.f32 %v651_v15, %v650_v9  ;;  %v763_v35 = vadd.f32 %v731_v18, %v619_v62  ;;  %v652_v36 = vmul.f32 %v620_v12, %v588_v19  ;;  %v732_v38 = vmul.f32 %v588_v19, %v588_v19  ;;  %v1592_v15 = vld [vmem:[#allocation6 + $0x60] sm:$0xff] }
 0x154   :  { %v1123_v33 = vpop.eup %1122  ;;  %v653_v43 = vmul.f32 %v621_v20, %v589_v60  ;;  %v733_v46 = vmul.f32 %v589_v60, %v589_v60  ;;  %v590_v49 = vmul.f32 %v1119_v21, %v494_v47  ;;  %v591_v10 = vmul.f32 %v1121_v28, %v495_v53 }
 0x155   :  { %v1125_v42 = vpop.eup %1124  ;;  %685 = vadd.xlane.f32.xlu0 %v684_v0  ;;  %v796_v17 = vadd.f32 %v763_v35, %v762_v24  ;;  %v764_v50 = vadd.f32 %v732_v38, %v620_v12  ;;  %v496_v47 = vsel %vm464_vm2, 1.0, %v1537_v45  ;;  %v532_v53 = vadd.f32 1.0, %v1123_v33  ;;  %v624_v24 = vld [vmem:[#allocation9 + $0x50] sm:$0xff]  ;;  %v625_v35 = vld [vmem:[#allocation9 + $0x58] sm:$0xff] }
 0x156   :  { %v1573_v54 = vpop.eup %1126  ;;  %v687_v22 = vadd.f32 %v653_v43, %v652_v36  ;;  %v765_v57 = vadd.f32 %v733_v46, %v621_v20  ;;  %v654_v58 = vmul.f32 %v1565_v39, %v590_v49  ;;  %v655_v61 = vmul.f32 %v1567_v40, %v591_v10 }
 0x157   :  { %797 = vadd.xlane.f32.xlu1 %v796_v17  ;;  %v533_v62 = vadd.f32 1.0, %v1125_v42  ;;  %v758_v30 = vadd.f32 %v726_v27, %v1527_v37  ;;  %v759_v8 = vadd.f32 %v727_v63, %v1534_v16  ;;  %1132 = vpow2.f32 %v1550_v55  ;;  %v1129_v9 = vpop.eup %1128 }
 0x158   :  { %v799_v7 = vadd.f32 %v765_v57, %v764_v50  ;;  %v690_v11 = vadd.f32 %v655_v61, %v654_v58  ;;  %1134 = vrcp.f32 %v532_v53  ;;  %v534_v12 = vadd.f32 1.0, %v1573_v54 }
 0x159   :  { %688 = vadd.xlane.f32.xlu0 %v687_v22  ;;  %v592_v45 = vmul.f32 %v1129_v9, %v496_v47  ;;  %1136 = vrcp.f32 %v533_v62  ;;  %v760_v14 = vadd.f32 %v728_v51, %v1511_v26  ;;  %v428_v5 = vmul.f32 1.442695, %v1559_v23  ;;  %v1598_v26 = vld [vmem:[#allocation6 + $0x68] sm:$0xff] }
 0x15a   :  { %v761_v37 = vadd.f32 %v729_v4, %v1521_v31  ;;  %1138 = vrcp.f32 %v534_v12  ;;  %v378_v16 = vsub.f32 0.0, %v346_v6  ;;  %v379_v55 = vsub.f32 0.0, %v347_v13  ;;  %v1618_v4 = vld [vmem:[#allocation9 + $0x70] sm:$0xff]  ;;  %v1624_v12 = vld [vmem:[#allocation6 + $0xc0] sm:$0xff] }
 0x15b   :  { %800 = vadd.xlane.f32.xlu1 %v799_v7  ;;  %v790_v18 = vadd.f32 %v759_v8, %v758_v30  ;;  %1140 = vpow2.f32 %v426_v32  ;;  %v734_v31 = vmul.f32 %v590_v49, %v590_v49  ;;  %v736_v20 = vmul.f32 %v592_v45, %v592_v45 }
 0x15c   :  { %1142 = vpow2.f32 %v428_v5  ;;  %v430_v23 = vmul.f32 1.442695, %v378_v16  ;;  %v432_v19 = vmul.f32 1.442695, %v379_v55  ;;  %v500_v6 = vsel %vm468_vm4, 1.0, %v1123_v33  ;;  %v1131_v21 = vpop.eup %1130 }
 0x15d   :  { %691 = vadd.xlane.f32.xlu0 %v690_v11  ;;  %v501_v13 = vsel %vm469_vm5, 1.0, %v1125_v42  ;;  %v338_v34 = vand.u32 2147483647, %v1592_v15  ;;  %v793_v60 = vadd.f32 %v761_v37, %v760_v14  ;;  %v735_v27 = vmul.f32 %v591_v10, %v591_v10 }
 0x15e   :  { %1144 = vpow2.f32 %v430_v23  ;;  %v339_v63 = vand.u32 2147483647, %v1598_v26  ;;  %v593_v28 = vmul.f32 %v1131_v21, %v497_v1  ;;  %v656_v0 = vmul.f32 %v624_v24, %v592_v45  ;;  %v1633_v23 = vld [vmem:[#allocation6 + $0xc8] sm:$0xff] }
 0x15f   :  { %1146 = vpow2.f32 %v432_v19  ;;  %v370_v41 = vsub.f32 0.0, %v338_v34  ;;  %v766_v44 = vadd.f32 %v734_v31, %v1565_v39  ;;  %v348_v38 = vand.u32 2147483647, %v1605_v3  ;;  %v1639_v34 = vld [vmem:[#allocation6 + $0xd0] sm:$0xff] }
 0x160   :  { %v371_v36 = vsub.f32 0.0, %v339_v63  ;;  %v349_v33 = vand.u32 2147483647, %v1607_v59  ;;  %v737_v46 = vmul.f32 %v593_v28, %v593_v28  ;;  %v768_v49 = vadd.f32 %v736_v20, %v624_v24 }
 0x161   :  { %791 = vadd.xlane.f32.xlu0 %v790_v18  ;;  %v1133_v43 = vpop.eup %1132  ;;  %v657_v10 = vmul.f32 %v625_v35, %v593_v28  ;;  %v414_v42 = vmul.f32 1.442695, %v370_v41  ;;  %v767_v51 = vadd.f32 %v735_v27, %v1567_v40  ;;  %v380_v57 = vsub.f32 0.0, %v348_v38  ;;  %v1620_v40 = vld [vmem:[#allocation9 + $0x78] sm:$0xff] }
 0x162   :  { %v1135_v17 = vpop.eup %1134  ;;  %v535_v50 = vadd.f32 1.0, %v1133_v43  ;;  %v416_v22 = vmul.f32 1.442695, %v371_v36  ;;  %v769_v61 = vadd.f32 %v737_v46, %v625_v35  ;;  %v381_v7 = vsub.f32 0.0, %v349_v33 }
 0x163   :  { %v1137_v58 = vpop.eup %1136  ;;  %v1614_v47 = vmul.f32 %v1135_v17, %v500_v6  ;;  %v693_v39 = vadd.f32 %v657_v10, %v656_v0  ;;  %1148 = vpow2.f32 %v414_v42  ;;  %v434_v30 = vmul.f32 1.442695, %v380_v57  ;;  %v1661_v17 = vld [vmem:[#allocation9 + $0x88] sm:$0xff] }
 0x164   :  { %v1139_v53 = vpop.eup %1138  ;;  %v1616_v62 = vmul.f32 %v1137_v58, %v501_v13  ;;  %1150 = vrcp.f32 %v535_v50  ;;  %v805_v9 = vadd.f32 %v769_v61, %v768_v49  ;;  %v502_v14 = vsel %vm470_vm6, 1.0, %v1573_v54  ;;  %v1668_v61 = vld [vmem:[#allocation6 + $0xe0] sm:$0xff] }
 0x165   :  { %794 = vadd.xlane.f32.xlu0 %v793_v60  ;;  %v1141_v8 = vpop.eup %1140  ;;  %v740_v11 = vmul.f32 %v1614_v47, %v1614_v47  ;;  %1152 = vpow2.f32 %v416_v22  ;;  %v802_v55 = vadd.f32 %v767_v51, %v766_v44  ;;  %v436_v31 = vmul.f32 1.442695, %v381_v7  ;;  %v1643_v60 = vld [vmem:[#allocation6 + $0xd8] sm:$0xff]  ;;  %v1652_v44 = vld [vmem:[#allocation9 + $0x80] sm:$0xff] }
 0x166   :  { %v1143_v32 = vpop.eup %1142  ;;  %v741_v45 = vmul.f32 %v1616_v62, %v1616_v62  ;;  %v536_v5 = vadd.f32 1.0, %v1141_v8  ;;  %1154 = vpow2.f32 %v434_v30  ;;  %806 = vadd.xlane.f32.xlu1 %v805_v9  ;;  %v350_v19 = vand.u32 2147483647, %v1624_v12 }
 0x167   :  { %v772_v37 = vadd.f32 %v740_v11, %v1618_v4  ;;  %v537_v16 = vadd.f32 1.0, %v1143_v32  ;;  %v1637_v52 = vmul.f32 %v1139_v53, %v502_v14  ;;  %v351_v21 = vand.u32 2147483647, %v1633_v23 }
 0x168   :  { %v1145_v1 = vpop.eup %1144  ;;  %v773_v18 = vadd.f32 %v741_v45, %v1620_v40  ;;  %1156 = vrcp.f32 %v536_v5  ;;  %v382_v24 = vsub.f32 0.0, %v350_v19  ;;  %v503_v27 = vsel %vm471_vm7, 1.0, %v1133_v43  ;;  %v1680_v45 = vld [vmem:[#allocation9 + $0x90] sm:$0xff]  ;;  %v1684_v5 = vld [vmem:[#allocation6 + $0xe8] sm:$0xff] }
 0x169   :  { %694 = vadd.xlane.f32.xlu0 %v693_v39  ;;  %v1147_v20 = vpop.eup %1146  ;;  %1158 = vrcp.f32 %v537_v16  ;;  %v538_v54 = vadd.f32 1.0, %v1145_v1  ;;  %v742_v63 = vmul.f32 %v1637_v52, %v1637_v52  ;;  %v383_v28 = vsub.f32 0.0, %v351_v21 }
 0x16a   :  { %v811_v6 = vadd.f32 %v773_v18, %v772_v37  ;;  %v539_v13 = vadd.f32 1.0, %v1147_v20  ;;  %1160 = vpow2.f32 %v436_v31  ;;  %v438_v0 = vmul.f32 1.442695, %v382_v24  ;;  %v1687_v18 = vld [vmem:[#allocation9 + $0x98] sm:$0xff]  ;;  %v1705_v24 = vld [vmem:[#allocation9 + $0xa8] sm:$0xff] }
 0x16b   :  { %1162 = vrcp.f32 %v538_v54  ;;  %v352_v41 = vand.u32 2147483647, %v1639_v34  ;;  %v504_v36 = vsel %vm472_vm8, 1.0, %v1141_v8  ;;  %v353_v33 = vand.u32 2147483647, %v1643_v60 }
 0x16c   :  { %812 = vadd.xlane.f32.xlu1 %v811_v6  ;;  %1164 = vrcp.f32 %v539_v13  ;;  %v440_v49 = vmul.f32 1.442695, %v383_v28  ;;  %v505_v50 = vsel %vm473_vm9, 1.0, %v1143_v32  ;;  %v774_v57 = vadd.f32 %v742_v63, %v1652_v44  ;;  %v1701_v6 = vld [vmem:[#allocation9 + $0xa0] sm:$0xff] }
 0x16d   :  { %803 = vadd.xlane.f32.xlu0 %v802_v55  ;;  %v1647_v2 = vpop.eup %1148  ;;  %1166 = vpow2.f32 %v438_v0  ;;  %v384_v10 = vsub.f32 0.0, %v352_v41  ;;  %v385_v51 = vsub.f32 0.0, %v353_v33  ;;  %vm466_vm12 = vcmp.ge.f32.partialorder %v1592_v15, 0.0 }
 0x16e   :  { %v1151_v35 = vpop.eup %1150  ;;  %v530_v38 = vadd.f32 1.0, %v1647_v2  ;;  %v506_v9 = vsel %vm474_vm10, 1.0, %v1145_v1  ;;  %v507_v14 = vsel %vm475_vm11, 1.0, %v1147_v20  ;;  %v354_v37 = vand.u32 2147483647, %v1668_v61 }
 0x16f   :  { %v1153_v43 = vpop.eup %1152  ;;  %v1659_v46 = vmul.f32 %v1151_v35, %v503_v27  ;;  %v442_v53 = vmul.f32 1.442695, %v384_v10  ;;  %v444_v7 = vmul.f32 1.442695, %v385_v51  ;;  %vm467_vm13 = vcmp.ge.f32.partialorder %v1598_v26, 0.0  ;;  %v1721_v51 = vld [vmem:[#allocation6 + $0xf0] sm:$0xff] }
 0x170   :  { %v1155_v42 = vpop.eup %1154  ;;  %v531_v25 = vadd.f32 1.0, %v1153_v43  ;;  %1168 = vrcp.f32 %v530_v38  ;;  %vm476_vm14 = vcmp.ge.f32.partialorder %v1605_v3, 0.0  ;;  %v355_v13 = vand.u32 2147483647, %v1684_v5 }
 0x171   :  { %v743_v22 = vmul.f32 %v1659_v46, %v1659_v46  ;;  %v540_v58 = vadd.f32 1.0, %v1155_v42  ;;  %1170 = vpow2.f32 %v440_v49  ;;  %v498_v63 = vsel %vm466_vm12, 1.0, %v1647_v2 }
 0x172   :  { %v1157_v39 = vpop.eup %1156  ;;  %1172 = vrcp.f32 %v531_v25  ;;  %v386_v28 = vsub.f32 0.0, %v354_v37  ;;  %vm477_vm15 = vcmp.ge.f32.partialorder %v1607_v59, 0.0  ;;  %v499_v33 = vsel %vm467_vm13, 1.0, %v1153_v43 }
 0x173   :  { %v1159_v29 = vpop.eup %1158  ;;  %v775_v30 = vadd.f32 %v743_v22, %v1661_v17  ;;  %v1672_v8 = vmul.f32 %v1157_v39, %v504_v36  ;;  %1174 = vrcp.f32 %v540_v58  ;;  %v508_v2 = vsel %vm476_vm14, 1.0, %v1155_v42  ;;  %v627_v42 = vld [vmem:[#allocation9 + $0x68] sm:$0xff] }
 0x174   :  { %v1676_v11 = vpop.eup %1160  ;;  %v1678_v32 = vmul.f32 %v1159_v29, %v505_v50  ;;  %1176 = vpow2.f32 %v442_v53  ;;  %v387_v25 = vsub.f32 0.0, %v355_v13  ;;  %vm478_vm1 = vcmp.ge.f32.partialorder %v1624_v12, 0.0  ;;  %v1725_v29 = vld [vmem:[#allocation6 + $0xf8] sm:$0xff] }
 0x175   :  { %v1163_v16 = vpop.eup %1162  ;;  %v814_v55 = vadd.f32 %v775_v30, %v774_v57  ;;  %v744_v48 = vmul.f32 %v1672_v8, %v1672_v8  ;;  %v541_v1 = vadd.f32 1.0, %v1676_v11  ;;  %1178 = vpow2.f32 %v444_v7  ;;  %v626_v57 = vld [vmem:[#allocation9 + $0x60] sm:$0xff] }
 0x176   :  { %v1165_v31 = vpop.eup %1164  ;;  %v745_v56 = vmul.f32 %v1678_v32, %v1678_v32  ;;  %v1695_v19 = vmul.f32 %v1163_v16, %v506_v9  ;;  %v446_v26 = vmul.f32 1.442695, %v386_v28  ;;  %vm479_vm2 = vcmp.ge.f32.partialorder %v1633_v23, 0.0 }
 0x177   :  { %815 = vadd.xlane.f32.xlu1 %v814_v55  ;;  %v776_v20 = vadd.f32 %v744_v48, %v1680_v45  ;;  %v1699_v54 = vmul.f32 %v1165_v31, %v507_v14  ;;  %1180 = vrcp.f32 %v541_v1  ;;  %v1167_v0 = vpop.eup %1166  ;;  %v660_v9 = vmul.f32 %v1618_v4, %v1614_v47  ;;  %v1738_v4 = vld [vmem:[#allocation9 + $0xb0] sm:$0xff] }
 0x178   :  { %v777_v21 = vadd.f32 %v745_v56, %v1687_v18  ;;  %v746_v27 = vmul.f32 %v1695_v19, %v1695_v19  ;;  %v542_v49 = vadd.f32 1.0, %v1167_v0  ;;  %v356_v14 = vand.u32 2147483647, %v1721_v51 }
 0x179   :  { %v747_v41 = vmul.f32 %v1699_v54, %v1699_v54  ;;  %v509_v55 = vsel %vm477_vm15, 1.0, %v1676_v11  ;;  %v448_v48 = vmul.f32 1.442695, %v387_v25  ;;  %v661_v59 = vmul.f32 %v1620_v40, %v1616_v62 }
 0x17a   :  { %v1169_v35 = vpop.eup %1168  ;;  %v817_v36 = vadd.f32 %v777_v21, %v776_v20  ;;  %v778_v38 = vadd.f32 %v746_v27, %v1701_v6  ;;  %1182 = vrcp.f32 %v542_v49  ;;  %v357_v20 = vand.u32 2147483647, %v1725_v29 }
 0x17b   :  { %v1171_v10 = vpop.eup %1170  ;;  %v779_v50 = vadd.f32 %v747_v41, %v1705_v24  ;;  %v594_v15 = vmul.f32 %v1169_v35, %v498_v63  ;;  %v388_v11 = vsub.f32 0.0, %v356_v14  ;;  %v1744_v35 = vld [vmem:[#allocation9 + $0xb8] sm:$0xff]  ;;  %vm480_vm3 = vcmp.ge.f32.partialorder %v1639_v34, 0.0 }
 0x17c   :  { %v1173_v22 = vpop.eup %1172  ;;  %818 = vadd.xlane.f32.xlu1 %v817_v36  ;;  %v543_v58 = vadd.f32 1.0, %v1171_v10  ;;  %v510_v36 = vsel %vm478_vm1, 1.0, %v1167_v0  ;;  %v511_v25 = vsel %vm479_vm2, 1.0, %v1171_v10  ;;  %vm481_vm4 = vcmp.ge.f32.partialorder %v1643_v60, 0.0 }
 0x17d   :  { %v1175_v43 = vpop.eup %1174  ;;  %v820_v39 = vadd.f32 %v779_v50, %v778_v38  ;;  %v595_v53 = vmul.f32 %v1173_v22, %v499_v33  ;;  %v738_v7 = vmul.f32 %v594_v15, %v594_v15  ;;  %v658_v21 = vmul.f32 %v626_v57, %v594_v15 }
 0x17e   :  { %v1177_v3 = vpop.eup %1176  ;;  %v1727_v30 = vmul.f32 %v1175_v43, %v508_v2  ;;  %1184 = vrcp.f32 %v543_v58  ;;  %v389_v38 = vsub.f32 0.0, %v357_v20  ;;  %v450_v50 = vmul.f32 1.442695, %v388_v11 }
 0x17f   :  { %v739_v37 = vmul.f32 %v595_v53, %v595_v53  ;;  %v770_v16 = vadd.f32 %v738_v7, %v626_v57  ;;  %v1179_v1 = vpop.eup %1178  ;;  %v544_v56 = vadd.f32 1.0, %v1177_v3  ;;  %1186 = vpow2.f32 %v446_v26  ;;  %v638_v57 = vld [vmem:[#allocation9 + $0xc0] sm:$0xff] }
 0x180   :  { %821 = vadd.xlane.f32.xlu1 %v820_v39  ;;  %v748_v31 = vmul.f32 %v1727_v30, %v1727_v30  ;;  %v659_v27 = vmul.f32 %v627_v42, %v595_v53  ;;  %v545_v63 = vadd.f32 1.0, %v1179_v1  ;;  %v452_v62 = vmul.f32 1.442695, %v389_v38  ;;  %v639_v53 = vld [vmem:[#allocation9 + $0xc8] sm:$0xff] }
 0x181   :  { %v1181_v13 = vpop.eup %1180  ;;  %v771_v47 = vadd.f32 %v739_v37, %v627_v42  ;;  %1188 = vrcp.f32 %v544_v56  ;;  %v699_v58 = vadd.f32 %v661_v59, %v660_v9  ;;  %v662_v39 = vmul.f32 %v1652_v44, %v1637_v52 }
 0x182   :  { %v1740_v28 = vmul.f32 %v1181_v13, %v509_v55  ;;  %1190 = vrcp.f32 %v545_v63  ;;  %v780_v49 = vadd.f32 %v748_v31, %v1738_v4  ;;  %v696_v15 = vadd.f32 %v659_v27, %v658_v21  ;;  %v1770_v31 = vld [vmem:[#allocation9 + $0xd8] sm:$0xff] }
 0x183   :  { %v808_v41 = vadd.f32 %v771_v47, %v770_v16  ;;  %1192 = vpow2.f32 %v448_v48  ;;  %v663_v23 = vmul.f32 %v1661_v17, %v1659_v46  ;;  %v512_v34 = vsel %vm480_vm3, 1.0, %v1177_v3  ;;  %v1768_v48 = vld [vmem:[#allocation9 + $0xd0] sm:$0xff] }
 0x184   :  { %v749_v33 = vmul.f32 %v1740_v28, %v1740_v28  ;;  %v1183_v40 = vpop.eup %1182  ;;  %1194 = vpow2.f32 %v450_v50  ;;  %v513_v14 = vsel %vm481_vm4, 1.0, %v1179_v1  ;;  %v664_v60 = vmul.f32 %v1680_v45, %v1672_v8  ;;  %v642_v50 = vld [vmem:[#allocation9 + $0xe0] sm:$0xff] }
 0x185   :  { %809 = vadd.xlane.f32.xlu0 %v808_v41  ;;  %v606_v12 = vmul.f32 %v1183_v40, %v510_v36  ;;  %1196 = vpow2.f32 %v452_v62  ;;  %v665_v16 = vmul.f32 %v1687_v18, %v1678_v32  ;;  %v702_v46 = vadd.f32 %v663_v23, %v662_v39 }
 0x186   :  { %v781_v2 = vadd.f32 %v749_v33, %v1744_v35  ;;  %v666_v20 = vmul.f32 %v1701_v6, %v1695_v19  ;;  %v667_v27 = vmul.f32 %v1705_v24, %v1699_v54  ;;  %vm482_vm5 = vcmp.ge.f32.partialorder %v1668_v61, 0.0 }
 0x187   :  { %v750_v43 = vmul.f32 %v606_v12, %v606_v12  ;;  %v705_v56 = vadd.f32 %v665_v16, %v664_v60  ;;  %v670_v6 = vmul.f32 %v638_v57, %v606_v12  ;;  %vm483_vm6 = vcmp.ge.f32.partialorder %v1684_v5, 0.0  ;;  %v643_v12 = vld [vmem:[#allocation9 + $0xe8] sm:$0xff] }
 0x188   :  { %v1185_v0 = vpop.eup %1184  ;;  %v823_v22 = vadd.f32 %v781_v2, %v780_v49  ;;  %v708_v19 = vadd.f32 %v667_v27, %v666_v20  ;;  %vm484_vm7 = vcmp.ge.f32.partialorder %v1721_v51, 0.0  ;;  %vm485_vm8 = vcmp.ge.f32.partialorder %v1725_v29, 0.0 }
 0x189   :  { %697 = vadd.xlane.f32.xlu0 %v696_v15  ;;  %v607_v26 = vmul.f32 %v1185_v0, %v511_v25  ;;  %v1187_v10 = vpop.eup %1186  ;;  %v782_v42 = vadd.f32 %v750_v43, %v638_v57  ;;  %v645_v43 = vld [vmem:[#allocation9 + $0xf8] sm:$0xff]  ;;  %vm935_vm12 = vcmask 7168  }
 0x18a   :  { %824 = vadd.xlane.f32.xlu1 %v823_v22  ;;  %v546_v37 = vadd.f32 1.0, %v1187_v10  ;;  %v514_v41 = vsel %vm482_vm5, 1.0, %v1187_v10 }
 0x18b   :  { %v751_v7 = vmul.f32 %v607_v26, %v607_v26  ;;  %v1189_v9 = vpop.eup %1188  ;;  %v671_v36 = vmul.f32 %v639_v53, %v607_v26  ;;  %v644_v26 = vld [vmem:[#allocation9 + $0xf0] sm:$0xff] }
 0x18c   :  { %v1191_v55 = vpop.eup %1190  ;;  %v1764_v44 = vmul.f32 %v1189_v9, %v512_v34  ;;  %1198 = vrcp.f32 %v546_v37 }
 0x18d   :  { %v783_v52 = vadd.f32 %v751_v7, %v639_v53  ;;  %700 = vadd.xlane.f32.xlu0 %v699_v58  ;;  %v1193_v17 = vpop.eup %1192  ;;  %v1766_v3 = vmul.f32 %v1191_v55, %v513_v14  ;;  %v714_v61 = vadd.f32 %v671_v36, %v670_v6  ;;  %v669_v14 = vmul.f32 %v1744_v35, %v1740_v28 }
 0x18e   :  { %v752_v8 = vmul.f32 %v1764_v44, %v1764_v44  ;;  %v547_v45 = vadd.f32 1.0, %v1193_v17  ;;  %v1195_v32 = vpop.eup %1194  ;;  %v515_v54 = vsel %vm483_vm6, 1.0, %v1193_v17  ;;  %v672_v60 = vmul.f32 %v1768_v48, %v1764_v44 }
 0x18f   :  { %v826_v1 = vadd.f32 %v783_v52, %v782_v42  ;;  %v753_v18 = vmul.f32 %v1766_v3, %v1766_v3  ;;  %v1197_v13 = vpop.eup %1196  ;;  %v548_v21 = vadd.f32 1.0, %v1195_v32  ;;  %v516_v15 = vsel %vm484_vm7, 1.0, %v1195_v32 }
 0x190   :  { %v784_v47 = vadd.f32 %v752_v8, %v1768_v48  ;;  %1200 = vrcp.f32 %v547_v45  ;;  %v549_v59 = vadd.f32 1.0, %v1197_v13  ;;  %v517_v40 = vsel %vm485_vm8, 1.0, %v1197_v13 }
 0x191   :  { %827 = vadd.xlane.f32.xlu1 %v826_v1  ;;  %703 = vadd.xlane.f32.xlu0 %v702_v46  ;;  %v785_v63 = vadd.f32 %v753_v18, %v1770_v31  ;;  %1202 = vrcp.f32 %v548_v21  ;;  %v668_v42 = vmul.f32 %v1738_v4, %v1727_v30  ;;  %v673_v16 = vmul.f32 %v1770_v31, %v1766_v3 }
 0x192   :  { %1204 = vrcp.f32 %v549_v59 }
 0x193   :  { %v829_v11 = vadd.f32 %v785_v63, %v784_v47  ;;  %v711_v9 = vadd.f32 %v669_v14, %v668_v42  ;;  %v717_v55 = vadd.f32 %v673_v16, %v672_v60 }
 0x195   :  { %706 = vadd.xlane.f32.xlu0 %v705_v56  ;;  %830 = vadd.xlane.f32.xlu1 %v829_v11 }
 0x196   :  { %v1199_v38 = vpop.eup %1198 }
 0x197   :  { %v610_v33 = vmul.f32 %v1199_v38, %v514_v41  ;;  %v231_v41 = vld [vmem:[%s1434_s6 + $0x8] sm:$0xff]  ;;  %v230_v38 = vld [vmem:[%s1434_s6] sm:$0xff] }
 0x198   :  { %vm247_vm9 = vcmp.gt.s32.totalorder %v231_v41, 0  ;;  %vm246_vm10 = vcmp.gt.s32.totalorder %v230_v38, 0 }
 0x199   :  { %709 = vadd.xlane.f32.xlu0 %v708_v19  ;;  %v754_v24 = vmul.f32 %v610_v33, %v610_v33  ;;  %v674_v2 = vmul.f32 %v642_v50, %v610_v33 }
 0x19a   :  { %v1201_v49 = vpop.eup %1200 }
 0x19b   :  { %v611_v62 = vmul.f32 %v1201_v49, %v515_v54  ;;  %v1203_v25 = vpop.eup %1202  ;;  %v786_v22 = vadd.f32 %v754_v24, %v642_v50  ;;  %v232_v50 = vld [vmem:[%s1434_s6 + $0x10] sm:$0xff] }
 0x19c   :  { %v1205_v5 = vpop.eup %1204  ;;  %v612_v57 = vmul.f32 %v1203_v25, %v516_v15  ;;  %v1343_v15 = vmov 0.0   ;;  %vm248_vm11 = vcmp.gt.s32.totalorder %v232_v50, 0 }
 0x19d   :  { %715 = vadd.xlane.f32.xlu0 %v714_v61  ;;  %v755_v0 = vmul.f32 %v611_v62, %v611_v62  ;;  %v675_v51 = vmul.f32 %v643_v12, %v611_v62  ;;  %v613_v58 = vmul.f32 %v1205_v5, %v517_v40  ;;  %v1041_v62 = vsel %vm247_vm9, 1.0, %v1343_v15 }
 0x19e   :  { %v756_v39 = vmul.f32 %v612_v57, %v612_v57  ;;  %v676_v52 = vmul.f32 %v644_v26, %v612_v57 }
 0x19f   :  { %v787_v29 = vadd.f32 %v755_v0, %v643_v12  ;;  %v720_v23 = vadd.f32 %v675_v51, %v674_v2  ;;  %v757_v10 = vmul.f32 %v613_v58, %v613_v58  ;;  %v677_v46 = vmul.f32 %v645_v43, %v613_v58 }
 0x1a0   :  { %v788_v34 = vadd.f32 %v756_v39, %v644_v26  ;;  %v234_v39 = vld [vmem:[%s1434_s6 + $0x20] sm:$0xff] }
 0x1a1   :  { %v832_v53 = vadd.f32 %v787_v29, %v786_v22  ;;  %721 = vadd.xlane.f32.xlu0 %v720_v23  ;;  %v789_v7 = vadd.f32 %v757_v10, %v645_v43  ;;  %v723_v17 = vadd.f32 %v677_v46, %v676_v52  ;;  %v1040_v22 = vsel %vm246_vm10, 1.0, %v1343_v15  ;;  %v233_v29 = vld [vmem:[%s1434_s6 + $0x18] sm:$0xff] }
 0x1a2   :  { %vm249_vm13 = vcmp.gt.s32.totalorder %v233_v29, 0  ;;  %vm250_vm14 = vcmp.gt.s32.totalorder %v234_v39, 0 }
 0x1a3   :  { %833 = vadd.xlane.f32.xlu1 %v832_v53  ;;  %v835_v37 = vadd.f32 %v789_v7, %v788_v34  ;;  %v1042_v7 = vsel %vm248_vm11, 1.0, %v1343_v15 }
 0x1a7   :  { %836 = vadd.xlane.f32.xlu1 %v835_v37 }
 0x1ab   :  { %712 = vadd.xlane.f32.xlu1 %v711_v9 }
 0x1af   :  { %718 = vadd.xlane.f32.xlu1 %v717_v55 }
 0x1b3   :  { %724 = vadd.xlane.f32.xlu1 %v723_v17  ;;  %v235_v17 = vld [vmem:[%s1434_s6 + $0x28] sm:$0xff] }
 0x1b4   :  { %vm251_vm15 = vcmp.gt.s32.totalorder %v235_v17, 0 }
 0x1db   :  { %v683_v30 = vpop.xlane.xlu0 %682 }
 0x1dc   :  { %v855_v63 = vmul.f32 2.0, %v683_v30 }
 0x1dd   :  { %v680_v35 = vpop.xlane.xlu1 %679 }
 0x1de   :  { %v854_v6 = vmul.f32 2.0, %v680_v35  ;;  %v1044_v35 = vsel %vm250_vm14, 1.0, %v1343_v15 }
 0x1e2   :  { %v686_v4 = vpop.xlane.xlu0 %685 }
 0x1e3   :  { %v856_v61 = vmul.f32 2.0, %v686_v4  ;;  %v1043_v4 = vsel %vm249_vm13, 1.0, %v1343_v15 }
 0x1e4   :  { %v798_v45 = vpop.xlane.xlu1 %797 }
 0x1e5   :  { %v840_v31 = vadd.f32 0.002, %v798_v45 }
 0x1e6   :  { %v689_v1 = vpop.xlane.xlu0 %688 }
 0x1e7   :  { %v857_v57 = vmul.f32 2.0, %v689_v1 }
 0x1e8   :  { %v801_v18 = vpop.xlane.xlu1 %800 }
 0x1e9   :  { %v841_v13 = vadd.f32 0.002, %v801_v18 }
 0x1ea   :  { %v692_v28 = vpop.xlane.xlu0 %691 }
 0x1eb   :  { %v858_v51 = vmul.f32 2.0, %v692_v28 }
 0x1ee   :  { %v792_v8 = vpop.xlane.xlu0 %791 }
 0x1ef   :  { %v838_v56 = vadd.f32 0.002, %v792_v8 }
 0x1f2   :  { %v795_v32 = vpop.xlane.xlu0 %794 }
 0x1f3   :  { %v839_v44 = vadd.f32 0.002, %v795_v32  ;;  %v807_v3 = vpop.xlane.xlu1 %806 }
 0x1f4   :  { %v843_v11 = vadd.f32 0.002, %v807_v3 }
 0x1f5   :  { %1206 = vrcp.f32 %v839_v44 }
 0x1f6   :  { %v695_v48 = vpop.xlane.xlu0 %694  ;;  %1208 = vrcp.f32 %v838_v56 }
 0x1f7   :  { %1210 = vrcp.f32 %v840_v31  ;;  %v859_v37 = vmul.f32 2.0, %v695_v48  ;;  %v236_v48 = vld [vmem:[%s1434_s6 + $0x30] sm:$0xff] }
 0x1f8   :  { %1212 = vrcp.f32 %v841_v13  ;;  %vm252_vm1 = vcmp.gt.s32.totalorder %v236_v48, 0  ;;  %v242_v48 = vld [vmem:[%s1434_s6 + $0x60] sm:$0xff] }
 0x1f9   :  { %v813_v47 = vpop.xlane.xlu1 %812  ;;  %vm258_vm6 = vcmp.gt.s32.totalorder %v242_v48, 0 }
 0x1fa   :  { %v804_v20 = vpop.xlane.xlu0 %803  ;;  %v845_v43 = vadd.f32 0.002, %v813_v47 }
 0x1fb   :  { %v842_v21 = vadd.f32 0.002, %v804_v20 }
 0x1fd   :  { %1214 = vrcp.f32 %v842_v21 }
 0x1fe   :  { %1216 = vrcp.f32 %v843_v11 }
 0x1ff   :  { %v1207_v27 = vpop.eup %1206 }
 0x200   :  { %v1209_v59 = vpop.eup %1208  ;;  %v887_v36 = vmul.f32 %v1207_v27, %v855_v63  ;;  %v1045_v63 = vsel %vm251_vm15, 1.0, %v1343_v15 }
 0x201   :  { %v886_v33 = vmul.f32 %v1209_v59, %v854_v6  ;;  %v1211_v54 = vpop.eup %1210 }
 0x202   :  { %v903_v24 = vsub.f32 1.0, %v887_v36  ;;  %v1213_v25 = vpop.eup %1212  ;;  %v888_v12 = vmul.f32 %v1211_v54, %v856_v61  ;;  %v1046_v36 = vsel %vm252_vm1, 1.0, %v1343_v15  ;;  %v237_v54 = vld [vmem:[%s1434_s6 + $0x38] sm:$0xff] }
 0x203   :  { %v902_v5 = vsub.f32 1.0, %v886_v33  ;;  %v889_v10 = vmul.f32 %v1213_v25, %v857_v57  ;;  %vm253_vm2 = vcmp.gt.s32.totalorder %v237_v54, 0 }
 0x204   :  { %v816_v19 = vpop.xlane.xlu1 %815  ;;  %v920_v58 = vmul.f32 %v1041_v62, %v903_v24  ;;  %v904_v23 = vsub.f32 1.0, %v888_v12  ;;  %v238_v12 = vld [vmem:[%s1434_s6 + $0x40] sm:$0xff] }
 0x205   :  { %v919_v53 = vmul.f32 %v1040_v22, %v902_v5  ;;  %v846_v16 = vadd.f32 0.002, %v816_v19  ;;  %v905_v52 = vsub.f32 1.0, %v889_v10  ;;  %vm254_vm3 = vcmp.gt.s32.totalorder %v238_v12, 0 }
 0x206   :  { %v937_v14 = vsel %vm935_vm12, %v920_v58, 0.0  ;;  %v921_v55 = vmul.f32 %v1042_v7, %v904_v23 }
 0x207   :  { %v1215_v0 = vpop.eup %1214  ;;  %v936_v46 = vsel %vm935_vm12, %v919_v53, 0.0  ;;  %v922_v3 = vmul.f32 %v1043_v4, %v905_v52 }
 0x208   :  { %v890_v34 = vmul.f32 %v1215_v0, %v858_v51  ;;  %v1217_v60 = vpop.eup %1216  ;;  %v938_v1 = vadd.f32 %v937_v14, %v936_v46  ;;  %v939_v56 = vsel %vm935_vm12, %v921_v55, 0.0 }
 0x209   :  { %v819_v40 = vpop.xlane.xlu1 %818  ;;  %v891_v8 = vmul.f32 %v1217_v60, %v859_v37  ;;  %v941_v41 = vsel %vm935_vm12, %v922_v3, 0.0 }
 0x20a   :  { %v906_v30 = vsub.f32 1.0, %v890_v34  ;;  %v847_v28 = vadd.f32 0.002, %v819_v40  ;;  %v940_v47 = vadd.f32 %v939_v56, %v938_v1 }
 0x20b   :  { %v907_v21 = vsub.f32 1.0, %v891_v8 }
 0x20c   :  { %v923_v31 = vmul.f32 %v1044_v35, %v906_v30  ;;  %v942_v38 = vadd.f32 %v941_v41, %v940_v47  ;;  %v244_v41 = vld [vmem:[%s1434_s6 + $0x70] sm:$0xff] }
 0x20d   :  { %v822_v42 = vpop.xlane.xlu1 %821  ;;  %v924_v61 = vmul.f32 %v1045_v63, %v907_v21  ;;  %vm260_vm8 = vcmp.gt.s32.totalorder %v244_v41, 0 }
 0x20e   :  { %v848_v13 = vadd.f32 0.002, %v822_v42  ;;  %v943_v19 = vsel %vm935_vm12, %v923_v31, 0.0  ;;  %v240_v42 = vld [vmem:[%s1434_s6 + $0x50] sm:$0xff] }
 0x20f   :  { %v944_v50 = vadd.f32 %v943_v19, %v942_v38  ;;  %v945_v0 = vsel %vm935_vm12, %v924_v61, 0.0  ;;  %vm256_vm5 = vcmp.gt.s32.totalorder %v240_v42, 0  ;;  %v243_v38 = vld [vmem:[%s1434_s6 + $0x68] sm:$0xff] }
 0x210   :  { %vm259_vm9 = vcmp.gt.s32.totalorder %v243_v38, 0 }
 0x211   :  { %v946_v58 = vadd.f32 %v945_v0, %v944_v50 }
 0x212   :  { %v810_v49 = vpop.xlane.xlu0 %809 }
 0x213   :  { %v844_v2 = vadd.f32 0.002, %v810_v49 }
 0x215   :  { %1218 = vrcp.f32 %v844_v2 }
 0x216   :  { %v698_v26 = vpop.xlane.xlu0 %697  ;;  %1220 = vrcp.f32 %v845_v43  ;;  %v239_v43 = vld [vmem:[%s1434_s6 + $0x48] sm:$0xff] }
 0x217   :  { %v860_v45 = vmul.f32 2.0, %v698_v26  ;;  %1222 = vrcp.f32 %v846_v16  ;;  %v825_v44 = vpop.xlane.xlu1 %824  ;;  %v1047_v26 = vsel %vm253_vm2, 1.0, %v1343_v15  ;;  %vm255_vm4 = vcmp.gt.s32.totalorder %v239_v43, 0 }
 0x218   :  { %1224 = vrcp.f32 %v847_v28  ;;  %v849_v53 = vadd.f32 0.002, %v825_v44  ;;  %v1049_v17 = vsel %vm255_vm4, 1.0, %v1343_v15  ;;  %v1050_v44 = vsel %vm256_vm5, 1.0, %v1343_v15 }
 0x219   :  { %1226 = vrcp.f32 %v848_v13  ;;  %v241_v13 = vld [vmem:[%s1434_s6 + $0x58] sm:$0xff] }
 0x21a   :  { %v701_v9 = vpop.xlane.xlu0 %700  ;;  %vm257_vm7 = vcmp.gt.s32.totalorder %v241_v13, 0 }
 0x21b   :  { %v861_v27 = vmul.f32 2.0, %v701_v9  ;;  %v1048_v9 = vsel %vm254_vm3, 1.0, %v1343_v15 }
 0x21e   :  { %v704_v32 = vpop.xlane.xlu0 %703  ;;  %v828_v33 = vpop.xlane.xlu1 %827 }
 0x21f   :  { %v1219_v18 = vpop.eup %1218  ;;  %v862_v49 = vmul.f32 2.0, %v704_v32  ;;  %v850_v62 = vadd.f32 0.002, %v828_v33 }
 0x220   :  { %v892_v20 = vmul.f32 %v1219_v18, %v860_v45  ;;  %v1221_v6 = vpop.eup %1220 }
 0x221   :  { %v893_v24 = vmul.f32 %v1221_v6, %v861_v27  ;;  %v1223_v25 = vpop.eup %1222  ;;  %1228 = vrcp.f32 %v850_v62 }
 0x222   :  { %v707_v59 = vpop.xlane.xlu0 %706  ;;  %v908_v11 = vsub.f32 1.0, %v892_v20  ;;  %v894_v57 = vmul.f32 %v1223_v25, %v862_v49  ;;  %v1225_v51 = vpop.eup %1224  ;;  %1230 = vrcp.f32 %v849_v53  ;;  %v245_v25 = vld [vmem:[%s1434_s6 + $0x78] sm:$0xff] }
 0x223   :  { %v863_v2 = vmul.f32 2.0, %v707_v59  ;;  %v909_v22 = vsub.f32 1.0, %v893_v24  ;;  %v831_v29 = vpop.xlane.xlu1 %830  ;;  %v1227_v14 = vpop.eup %1226  ;;  %v1051_v24 = vsel %vm257_vm7, 1.0, %v1343_v15  ;;  %vm261_vm10 = vcmp.gt.s32.totalorder %v245_v25, 0 }
 0x224   :  { %v925_v40 = vmul.f32 %v1046_v36, %v908_v11  ;;  %v910_v7 = vsub.f32 1.0, %v894_v57  ;;  %v851_v52 = vadd.f32 0.002, %v831_v29  ;;  %v1052_v36 = vsel %vm258_vm6, 1.0, %v1343_v15 }
 0x225   :  { %v895_v23 = vmul.f32 %v1225_v51, %v863_v2  ;;  %v926_v34 = vmul.f32 %v1047_v26, %v909_v22  ;;  %v1054_v51 = vsel %vm260_vm8, 1.0, %v1343_v15 }
 0x226   :  { %v710_v5 = vpop.xlane.xlu0 %709  ;;  %v947_v39 = vsel %vm935_vm12, %v925_v40, 0.0  ;;  %v927_v4 = vmul.f32 %v1048_v9, %v910_v7 }
 0x227   :  { %v864_v10 = vmul.f32 2.0, %v710_v5  ;;  %v948_v37 = vadd.f32 %v947_v39, %v946_v58  ;;  %v911_v16 = vsub.f32 1.0, %v895_v23  ;;  %v949_v30 = vsel %vm935_vm12, %v926_v34, 0.0 }
 0x228   :  { %v951_v56 = vsel %vm935_vm12, %v927_v4, 0.0  ;;  %v1053_v58 = vsel %vm259_vm9, 1.0, %v1343_v15 }
 0x229   :  { %v896_v55 = vmul.f32 %v1227_v14, %v864_v10  ;;  %v950_v35 = vadd.f32 %v949_v30, %v948_v37  ;;  %v928_v8 = vmul.f32 %v1049_v17, %v911_v16  ;;  %v1055_v37 = vsel %vm261_vm10, 1.0, %v1343_v15 }
 0x22a   :  { %v716_v60 = vpop.xlane.xlu0 %715 }
 0x22b   :  { %v866_v28 = vmul.f32 2.0, %v716_v60  ;;  %v912_v45 = vsub.f32 1.0, %v896_v55  ;;  %v1229_v32 = vpop.eup %1228  ;;  %v952_v20 = vadd.f32 %v951_v56, %v950_v35  ;;  %v953_v47 = vsel %vm935_vm12, %v928_v8, 0.0 }
 0x22c   :  { %v1231_v19 = vpop.eup %1230 }
 0x22d   :  { %v898_v31 = vmul.f32 %v1229_v32, %v866_v28  ;;  %v929_v21 = vmul.f32 %v1050_v44, %v912_v45  ;;  %v954_v6 = vadd.f32 %v953_v47, %v952_v20 }
 0x22e   :  { %v722_v27 = vpop.xlane.xlu0 %721 }
 0x22f   :  { %v914_v11 = vsub.f32 1.0, %v898_v31  ;;  %v868_v33 = vmul.f32 2.0, %v722_v27  ;;  %v955_v54 = vsel %vm935_vm12, %v929_v21, 0.0 }
 0x230   :  { %v834_v46 = vpop.xlane.xlu1 %833  ;;  %v956_v5 = vadd.f32 %v955_v54, %v954_v6 }
 0x231   :  { %v852_v1 = vadd.f32 0.002, %v834_v46  ;;  %v931_v40 = vmul.f32 %v1052_v36, %v914_v11 }
 0x233   :  { %1232 = vrcp.f32 %v852_v1  ;;  %v959_v23 = vsel %vm935_vm12, %v931_v40, 0.0 }
 0x234   :  { %1234 = vrcp.f32 %v851_v52  ;;  %v837_v18 = vpop.xlane.xlu1 %836 }
 0x235   :  { %v853_v3 = vadd.f32 0.002, %v837_v18  ;;  %v918_v18 = vld [vmem:[#allocation11] sm:$0x1] }
 0x237   :  { %1236 = vrcp.f32 %v853_v3 }
 0x238   :  { %v713_v63 = vpop.xlane.xlu1 %712 }
 0x239   :  { %v865_v59 = vmul.f32 2.0, %v713_v63 }
 0x23b   :  { %v897_v61 = vmul.f32 %v1231_v19, %v865_v59 }
 0x23c   :  { %v719_v49 = vpop.xlane.xlu1 %718 }
 0x23d   :  { %v1233_v50 = vpop.eup %1232  ;;  %v913_v62 = vsub.f32 1.0, %v897_v61  ;;  %v867_v2 = vmul.f32 2.0, %v719_v49 }
 0x23e   :  { %v1235_v12 = vpop.eup %1234  ;;  %v900_v0 = vmul.f32 %v1233_v50, %v868_v33 }
 0x23f   :  { %v930_v22 = vmul.f32 %v1051_v24, %v913_v62  ;;  %v899_v57 = vmul.f32 %v1235_v12, %v867_v2 }
 0x240   :  { %v916_v26 = vsub.f32 1.0, %v900_v0  ;;  %v725_v29 = vpop.xlane.xlu1 %724 }
 0x241   :  { %v1237_v43 = vpop.eup %1236  ;;  %v957_v39 = vsel %vm935_vm12, %v930_v22, 0.0  ;;  %v915_v10 = vsub.f32 1.0, %v899_v57  ;;  %v869_v53 = vmul.f32 2.0, %v725_v29 }
 0x242   :  { %v958_v34 = vadd.f32 %v957_v39, %v956_v5  ;;  %v933_v7 = vmul.f32 %v1054_v51, %v916_v26 }
 0x243   :  { %v932_v42 = vmul.f32 %v1053_v58, %v915_v10  ;;  %v901_v14 = vmul.f32 %v1237_v43, %v869_v53 }
 0x244   :  { %v960_v9 = vadd.f32 %v959_v23, %v958_v34  ;;  %v963_v55 = vsel %vm935_vm12, %v933_v7, 0.0 }
 0x245   :  { %v917_v60 = vsub.f32 1.0, %v901_v14  ;;  %v961_v16 = vsel %vm935_vm12, %v932_v42, 0.0 }
 0x246   :  { %v962_v52 = vadd.f32 %v961_v16, %v960_v9 }
 0x247   :  { %v934_v46 = vmul.f32 %v1055_v37, %v917_v60 }
 0x248   :  { %v964_v17 = vadd.f32 %v963_v55, %v962_v52 }
 0x249   :  { %v965_v30 = vsel %vm935_vm12, %v934_v46, 0.0 }
 0x24a   :  { %v966_v4 = vadd.f32 %v965_v30, %v964_v17 }
 0x24c   :  { %967 = vadd.xlane.f32.xlu0 %v966_v4 }
 0x2d9   :  { %v968_v1 = vpop.xlane.xlu0 %967 }
 0x2da   :  { %v969_v28 = vrot.slane %v968_v1, 4 }
 0x2dc   :  { %v970_v35 = vadd.f32 %v969_v28, %v968_v1 }
 0x2de   :  { %v971_v8 = vrot.slane %v970_v35, 2 }
 0x2e0   :  { %v972_v45 = vadd.f32 %v971_v8, %v970_v35 }
 0x2e2   :  { %v973_v32 = vrot.slane %v972_v45, 1 }
 0x2e4   :  { %v974_v15 = vadd.f32 %v973_v32, %v972_v45 }
 0x2e6   :  { %1062 = vpush %v974_v15 }
 0x317   :  { %s1063_s0 = spop %1062 }
 0x318   :  { %v976_v44 = vstv %s1063_s0 }
 0x319   :  { %v977_v48 = vadd.f32 %v976_v44, %v918_v18 }
 0x31b   :  { %978 = vst.msk [vmem:[#allocation11] sm:$0x1] %vm149_vm0, %v977_v48 }
 0x31c PF:  { %s1344_s5 = smov [#allocation11]   ;;  %s1345_s10 = smov [#allocation12]  }
 0x31d   :  { %s985_s30 = sshll.u32 %s1344_s5, 4  ;;  %s995_s12 = sshll.u32 %s1345_s10, 4  ;;  %s986_s30 = int_to_ptr.vmem [resolvable:$true] %s985_s30  ;;  %s996_s12 = int_to_ptr.vmem [resolvable:$true] %s995_s12 }
 0x31e   :  { %s1286_s13 = scalar_lea.vmem %s986_s30, 16  ;;  %s1290_s15 = scalar_lea.vmem %s986_s30, 32 }
 0x31f   :  { %p1287_p13 = scmp.ne.s32.totalorder %s986_s30, %s1286_s13  ;;  %p1291_p0 = scmp.lt.s32.totalorder %s986_s30, %s986_s30 }
 0x320   :  { %p1292_p1 = scmp.lt.s32.totalorder %s1290_s15, %s1286_s13 }
 0x322   :  { %p1293_p2 = por %p1292_p1, %p1291_p0 }
 0x324   :  { %p1294_p3 = pnand %p1293_p2, %p1287_p13 }
 0x326   :  { %1297 = shalt.err (!%p1294_p3)
}
 0x327   :  { %s1298_s7 = scalar_lea.hbm %s1875_s8, 16 }
 0x328   :  { %p1299_p4 = scmp.ne.s32.totalorder %s1875_s8, %s1298_s7  ;;  %p1302_p5 = scmp.lt.u32.totalorder %s1298_s7, %s1875_s8 }
 0x32a   :  { %p1304_p6 = pnand %p1302_p5, %p1299_p4 }
 0x32c   :  { %1307 = shalt.err (!%p1304_p6)
}
 0x32d   :  { %988 = dma.vmem_to_hbm [thread:$0]  %s986_s30, 16, %s1875_s8, [#allocation8]  }
 0x32e   :  { %s1308_s22 = scalar_lea.vmem %s996_s12, 16  ;;  %s1312_s1 = scalar_lea.vmem %s996_s12, 32 }
 0x32f   :  { %p1309_p7 = scmp.ne.s32.totalorder %s996_s12, %s1308_s22  ;;  %p1313_p8 = scmp.lt.s32.totalorder %s996_s12, %s996_s12 }
 0x330   :  { %p1314_p9 = scmp.lt.s32.totalorder %s1312_s1, %s1308_s22 }
 0x332   :  { %p1315_p10 = por %p1314_p9, %p1313_p8 }
 0x334   :  { %p1316_p11 = pnand %p1315_p10, %p1309_p7 }
 0x336   :  { %1319 = shalt.err (!%p1316_p11)
}
 0x337   :  { %s1320_s25 = scalar_lea.hbm %s1876_s9, 16 }
 0x338   :  { %p1321_p12 = scmp.ne.s32.totalorder %s1876_s9, %s1320_s25  ;;  %p1324_p13 = scmp.lt.u32.totalorder %s1320_s25, %s1876_s9 }
 0x33a   :  { %p1326_p0 = pnand %p1324_p13, %p1321_p12 }
 0x33c   :  { %1329 = shalt.err (!%p1326_p0)
}
 0x33d   :  { %998 = dma.vmem_to_hbm [thread:$0]  %s996_s12, 16, %s1876_s9, [#allocation13]  }
 0x33e   :  { %1334 = dma.done.wait [#allocation8], 16  }
 0x33f   :  { %1335 = vsyncadd [#allocation8], 4294967280 }
 0x340   :  { %1336 = dma.done.wait [#allocation13], 16  }
 0x341   :  { %1337 = vsyncadd [#allocation13], 4294967280 }
 0x342   :  { %1005 = vsyncpa [#allocation7], 1 }
 0x343   :  { %1006 = vsyncpa [#allocation10], 1 }
 0x344   :  { %1007 = vsyncpa [#allocation8], 1 }
 0x345   :  { %1008 = vsyncpa [#allocation13], 1 }

</bundles_post_ra>
